<compile_context>
chip_gen: v5e
topology: v5e:2x2
jax: 0.10.0
libtpu: 0.0.40
codegen_flags: <defaults>
</compile_context>

<pallas_src>
import numpy as np
import jax
import jax.numpy as jnp
from jax.experimental import pallas as pl
from jax.experimental.pallas import tpu as pltpu

L_IN = 12        # Linear1 expects 3*64 features => L/4 == 3 => input length 12
BN_EPS = 1e-5
FPAD = 256       # padded per-stage feature width (multiple of 256)
HPAD = 128       # padded hidden width for Linear1


# --------------------------------- kernel ----------------------------------
def cnn_model2_kernel(x_ref,
                      w1_ref, b1_ref,
                      w2_ref, b2_ref,
                      w3_ref, b3_ref,
                      w4_ref, b4_ref,
                      wl1_ref, bl1_ref,
                      wl2_ref, bl2_ref,
                      out_ref):
    f32, bf16 = jnp.float32, jnp.bfloat16

    def mm(a, w_ref, b_ref):
        # bf16 x bf16 MXU matmul, f32 accumulate, f32 bias.
        return jnp.dot(a, w_ref[...], preferred_element_type=f32) + b_ref[...]

    x = x_ref[...].astype(bf16)                                   # (BT, 12)

    # Conv1(1->16) + ReLU (BN1 folded downstream).
    a1 = jnp.maximum(mm(x, w1_ref, b1_ref), 0.0).astype(bf16)     # (BT, 256)

    # Conv2(16->32) + ReLU + MaxPool(2,2) (BN2 folded downstream).
    # Even/odd output positions fused into one (256, 512) GEMM; pooling is a
    # lane-aligned max of the halves.  max(relu(e), relu(o)) == relu(max(e, o)).
    z2 = mm(a1, w2_ref, b2_ref)                                   # (BT, 512)
    a2 = jnp.maximum(jnp.maximum(z2[:, :FPAD], z2[:, FPAD:]), 0.0).astype(bf16)

    # Conv3(32->64) + ReLU + MaxPool(2,2) (BN3 folded downstream) — same fusion.
    z3 = mm(a2, w3_ref, b3_ref)                                   # (BT, 512)
    a3 = jnp.maximum(jnp.maximum(z3[:, :FPAD], z3[:, FPAD:]), 0.0).astype(bf16)

    # Conv4(64->64) + ReLU (BN4 folded downstream).
    a4 = jnp.maximum(mm(a3, w4_ref, b4_ref), 0.0).astype(bf16)    # (BT, 256)

    # Flatten + Linear(192,32) + ReLU (flatten reorder + BN4 pre-folded; padded
    # rows/cols are zero so padded h columns stay exactly 0).
    h = jnp.maximum(mm(a4, wl1_ref, bl1_ref), 0.0)                # (BT, 128) f32

    # Dropout == identity (eval).  Linear(32,1) as a VPU multiply + lane reduce
    # — no MXU push and no 128x lane broadcast of the scalar output.
    out_ref[...] = (jnp.sum(h * wl2_ref[...], axis=-1, keepdims=True)
                    + bl2_ref[...])                               # (BT, 1)


# -------------------------------- wrapper -----------------------------------
def _round_up(n, m):
    return ((n + m - 1) // m) * m


def cnn_model2_forward(x, kparams, b_tile=1024):
    """x: (B, 12) float; kparams: output of prep_kernel_params."""
    x = x.astype(jnp.float32)
    B, L = x.shape
    assert L == L_IN

    bt = _round_up(min(b_tile, _round_up(B, 8)), 8)   # batch rows per grid step
    Bp = _round_up(B, bt)
    if Bp != B:
        x = jnp.pad(x, ((0, Bp - B), (0, 0)))

    in_specs = [pl.BlockSpec((bt, L_IN), lambda i: (i, 0))]
    # All weights/biases are 2-D constants: full block, fixed index.
    in_specs += [pl.BlockSpec(a.shape, lambda i: (0, 0)) for a in kparams]

    out = pl.pallas_call(
        cnn_model2_kernel,
        out_shape=jax.ShapeDtypeStruct((Bp, 1), jnp.float32),
        grid=(Bp // bt,),
        in_specs=in_specs,
        out_specs=pl.BlockSpec((bt, 1), lambda i: (i, 0)),
        compiler_params=pltpu.CompilerParams(
            dimension_semantics=("parallel",)),       # shard tiles across TCs
    )(x, *kparams)

    return jnp.squeeze(out[:B, 0])  # matches torch.squeeze on (B, 1)


# ------------------------ parameters (torch layouts) ------------------------
def init_torch_style_params(key):
    ks = jax.random.split(key, 20)

    def nrm(k, shape, scale=0.1):
        return scale * jax.random.normal(k, shape, dtype=jnp.float32)

    p = {
        "W1": nrm(ks[0], (16, 1, 3)),  "b1": nrm(ks[1], (16,)),
        "W2": nrm(ks[2], (32, 16, 3)), "b2": nrm(ks[3], (32,)),
        "W3": nrm(ks[4], (64, 32, 3)), "b3": nrm(ks[5], (64,)),
        "W4": nrm(ks[6], (64, 64, 3)), "b4": nrm(ks[7], (64,)),
        "WL1": nrm(ks[8], (32, 192)),  "bL1": nrm(ks[9], (32,)),
        "WL2": nrm(ks[10], (1, 32)),   "bL2": nrm(ks[11], (1,)),
    }
    # BatchNorm1d params (affine) + running stats.
    for i, (C, kg, kb) in enumerate([(16, ks[12], ks[13]), (32, ks[14], ks[15]),
                                     (64, ks[16], ks[17]), (64, ks[18], ks[19])],
                                    start=1):
        p[f"g{i}"] = 1.0 + 0.1 * jax.random.normal(kg, (C,), dtype=jnp.float32)
        p[f"be{i}"] = 0.1 * jax.random.normal(kb, (C,), dtype=jnp.float32)
        p[f"m{i}"] = jnp.zeros((C,), jnp.float32)
        p[f"v{i}"] = jnp.ones((C,), jnp.float32)
    return p


def prep_kernel_params(p):
    """Host-side lowering of torch conv/BN/linear params into padded, fused,
    bf16 band matrices with BN folded into the downstream weights."""
    def npa(a):
        return np.asarray(a, dtype=np.float32)

    def bn_fold(i):
        g, be = npa(p[f"g{i}"]), npa(p[f"be{i}"])
        m, v = npa(p[f"m{i}"]), npa(p[f"v{i}"])
        s = g / np.sqrt(v + BN_EPS)
        return s, be - m * s

    def band(W, L_in, out_pos):
        # W: torch Conv1d weight (Cout, Cin, 3); pad=1, stride=1.
        # Returns (L_in*Cin, len(out_pos)*Cout); row = l_in*Cin + cin,
        # col = j*Cout + cout for output position out_pos[j].
        Cout, Cin, _ = W.shape
        M = np.zeros((L_in * Cin, len(out_pos) * Cout), np.float32)
        for j, lo in enumerate(out_pos):
            for k in range(3):
                li = lo + k - 1
                if 0 <= li < L_in:
                    M[li * Cin:(li + 1) * Cin, j * Cout:(j + 1) * Cout] += W[:, :, k].T
        return M

    def pad2(M, rows, cols):
        out = np.zeros((rows, cols), np.float32)
        out[:M.shape[0], :M.shape[1]] = M
        return out

    def padrow(v, n):
        out = np.zeros((1, n), np.float32)
        out[0, :v.shape[0]] = v
        return out

    W1, W2, W3, W4 = npa(p["W1"]), npa(p["W2"]), npa(p["W3"]), npa(p["W4"])
    b1, b2, b3, b4 = npa(p["b1"]), npa(p["b2"]), npa(p["b3"]), npa(p["b4"])
    WL1, bL1 = npa(p["WL1"]), npa(p["bL1"])
    WL2, bL2 = npa(p["WL2"]), npa(p["bL2"])

    s1, t1 = bn_fold(1); s2, t2 = bn_fold(2)
    s3, t3 = bn_fold(3); s4, t4 = bn_fold(4)
    s1t, t1t = np.tile(s1, 12), np.tile(t1, 12)   # layout [l12][c16]
    s2t, t2t = np.tile(s2, 6),  np.tile(t2, 6)    # layout [p6][c32]
    s3t, t3t = np.tile(s3, 3),  np.tile(t3, 3)    # layout [q3][c64]
    s4t, t4t = np.tile(s4, 3),  np.tile(t4, 3)    # layout [q3][c64]

    # Layer 1: all 12 output positions in one band matrix, padded to 256 cols.
    w1 = pad2(band(W1, 12, list(range(12))), L_IN, FPAD)     # (12, 256)
    b1k = padrow(np.tile(b1, 12), FPAD)                      # (1, 256)

    # Layer 2: even/odd pool halves fused side by side, BN1 folded in.
    w2e = band(W2, 12, [0, 2, 4, 6, 8, 10])                  # (192, 192)
    w2o = band(W2, 12, [1, 3, 5, 7, 9, 11])
    b2t = np.tile(b2, 6)
    b2e, b2o = t1t @ w2e + b2t, t1t @ w2o + b2t              # shift uses unscaled W
    w2e, w2o = s1t[:, None] * w2e, s1t[:, None] * w2o        # then scale rows
    w2 = np.concatenate([pad2(w2e, FPAD, FPAD), pad2(w2o, FPAD, FPAD)], axis=1)
    b2k = np.concatenate([padrow(b2e, FPAD), padrow(b2o, FPAD)], axis=1)   # (1, 512)

    # Layer 3: even/odd pool halves fused, BN2 folded in.
    w3e = band(W3, 6, [0, 2, 4])                             # (192, 192)
    w3o = band(W3, 6, [1, 3, 5])
    b3t = np.tile(b3, 3)
    b3e, b3o = t2t @ w3e + b3t, t2t @ w3o + b3t
    w3e, w3o = s2t[:, None] * w3e, s2t[:, None] * w3o
    w3 = np.concatenate([pad2(w3e, FPAD, FPAD), pad2(w3o, FPAD, FPAD)], axis=1)
    b3k = np.concatenate([padrow(b3e, FPAD), padrow(b3o, FPAD)], axis=1)   # (1, 512)

    # Layer 4: single band matrix, BN3 folded in.
    w4 = band(W4, 3, [0, 1, 2])                              # (192, 192)
    b4k = padrow(t3t @ w4 + np.tile(b4, 3), FPAD)            # (1, 256)
    w4 = pad2(s3t[:, None] * w4, FPAD, FPAD)                 # (256, 256)

    # Linear1: torch flatten index is c*3 + l -> reorder rows to l*64 + c, fold
    # BN4, pad K to 256 / N to 128 (padded entries zero => padded h stays 0).
    wl1 = np.transpose(WL1.reshape(32, 64, 3), (2, 1, 0)).reshape(192, 32)
    bl1 = padrow(t4t @ wl1 + bL1, HPAD)                      # (1, 128)
    wl1 = pad2(s4t[:, None] * wl1, FPAD, HPAD)               # (256, 128)

    # Linear2: done in-kernel as a VPU multiply + lane reduce (f32).
    wl2 = pad2(WL2, 1, HPAD)                                 # (1, 128)
    bl2 = bL2.reshape(1, 1)                                  # (1, 1)

    def dev(a, dt):
        return jnp.asarray(np.asarray(a, np.float32), dtype=dt)

    bf, f32 = jnp.bfloat16, jnp.float32
    return (dev(w1, bf), dev(b1k, f32),
            dev(w2, bf), dev(b2k, f32),
            dev(w3, bf), dev(b3k, f32),
            dev(w4, bf), dev(b4k, f32),
            dev(wl1, bf), dev(bl1, f32),
            dev(wl2, f32), dev(bl2, f32))


# ---------------------------- pure-JAX reference ----------------------------
def reference_forward(x, p):
    y = x[:, None, :]                              # (B, 1, L) NCL

    def conv(y, W, b):
        out = jax.lax.conv_general_dilated(
            y, W, window_strides=(1,), padding=((1, 1),),
            dimension_numbers=("NCH", "OIH", "NCH"))
        return out + b[None, :, None]

    def bn(y, i):
        g, be, m, v = p[f"g{i}"], p[f"be{i}"], p[f"m{i}"], p[f"v{i}"]
        return ((y - m[None, :, None]) / jnp.sqrt(v[None, :, None] + BN_EPS)
                * g[None, :, None] + be[None, :, None])

    def pool(y):
        B, C, Ln = y.shape
        return jnp.max(y.reshape(B, C, Ln // 2, 2), axis=-1)

    y = bn(jax.nn.relu(conv(y, p["W1"], p["b1"])), 1)
    y = bn(pool(jax.nn.relu(conv(y, p["W2"], p["b2"]))), 2)
    y = bn(pool(jax.nn.relu(conv(y, p["W3"], p["b3"]))), 3)
    y = bn(jax.nn.relu(conv(y, p["W4"], p["b4"])), 4)
    y = y.reshape(y.shape[0], -1)                  # (B, 192) channel-major
    y = jax.nn.relu(y @ p["WL1"].T + p["bL1"])
    y = y @ p["WL2"].T + p["bL2"]
    return jnp.squeeze(y)


if __name__ == "__main__":
    key = jax.random.PRNGKey(0)
    kp, kx = jax.random.split(key)
    params = init_torch_style_params(kp)
    kparams = prep_kernel_params(params)

    # Small demo batch (single grid step, batch padded to the sublane multiple).
    B = 2
    x = jax.random.normal(kx, (B, L_IN), dtype=jnp.float32)
    out = jax.block_until_ready(cnn_model2_forward(x, kparams))
    ref = reference_forward(x, params)
    np.testing.assert_allclose(np.asarray(out), np.asarray(ref),
                               rtol=2e-2, atol=2e-2)

    # Multi-tile path (grid > 1) with batch padding, still small.
    B2 = 20
    x2 = jax.random.normal(jax.random.PRNGKey(1), (B2, L_IN), dtype=jnp.float32)
    out2 = jax.block_until_ready(cnn_model2_forward(x2, kparams, b_tile=8))
    ref2 = reference_forward(x2, params)
    np.testing.assert_allclose(np.asarray(out2), np.asarray(ref2),
                               rtol=2e-2, atol=2e-2)

    print("KERNEL_OK")
</pallas_src>

<mosaic_0001>
module attributes {stable_mosaic.version = 11 : i64} {
  func.func @cnn_model2_kernel(%arg0: i32, %arg1: memref<8x12xf32, #tpu.memory_space<vmem>>, %arg2: memref<12x256xbf16, #tpu.memory_space<vmem>>, %arg3: memref<1x256xf32, #tpu.memory_space<vmem>>, %arg4: memref<256x512xbf16, #tpu.memory_space<vmem>>, %arg5: memref<1x512xf32, #tpu.memory_space<vmem>>, %arg6: memref<256x512xbf16, #tpu.memory_space<vmem>>, %arg7: memref<1x512xf32, #tpu.memory_space<vmem>>, %arg8: memref<256x256xbf16, #tpu.memory_space<vmem>>, %arg9: memref<1x256xf32, #tpu.memory_space<vmem>>, %arg10: memref<256x128xbf16, #tpu.memory_space<vmem>>, %arg11: memref<1x128xf32, #tpu.memory_space<vmem>>, %arg12: memref<1x128xf32, #tpu.memory_space<vmem>>, %arg13: memref<1x1xf32, #tpu.memory_space<vmem>>, %arg14: memref<8x1xf32, #tpu.memory_space<vmem>>) attributes {dimension_semantics = [#tpu.dimension_semantics<parallel>], iteration_bounds = array<i64: 1>, scalar_prefetch = 0 : i64, scratch_operands = 0 : i64, tpu.core_type = #tpu.core_type<tc>, window_params = [{transform_indices = @transform_0, window_bounds = array<i64: 8, 12>}, {pipeline_mode = #tpu.pipeline_mode<synchronous>, transform_indices = @transform_1, window_bounds = array<i64: 12, 256>}, {pipeline_mode = #tpu.pipeline_mode<synchronous>, transform_indices = @transform_2, window_bounds = array<i64: 1, 256>}, {pipeline_mode = #tpu.pipeline_mode<synchronous>, transform_indices = @transform_3, window_bounds = array<i64: 256, 512>}, {pipeline_mode = #tpu.pipeline_mode<synchronous>, transform_indices = @transform_4, window_bounds = array<i64: 1, 512>}, {pipeline_mode = #tpu.pipeline_mode<synchronous>, transform_indices = @transform_5, window_bounds = array<i64: 256, 512>}, {pipeline_mode = #tpu.pipeline_mode<synchronous>, transform_indices = @transform_6, window_bounds = array<i64: 1, 512>}, {pipeline_mode = #tpu.pipeline_mode<synchronous>, transform_indices = @transform_7, window_bounds = array<i64: 256, 256>}, {pipeline_mode = #tpu.pipeline_mode<synchronous>, transform_indices = @transform_8, window_bounds = array<i64: 1, 256>}, {pipeline_mode = #tpu.pipeline_mode<synchronous>, transform_indices = @transform_9, window_bounds = array<i64: 256, 128>}, {pipeline_mode = #tpu.pipeline_mode<synchronous>, transform_indices = @transform_10, window_bounds = array<i64: 1, 128>}, {pipeline_mode = #tpu.pipeline_mode<synchronous>, transform_indices = @transform_11, window_bounds = array<i64: 1, 128>}, {pipeline_mode = #tpu.pipeline_mode<synchronous>, transform_indices = @transform_12, window_bounds = array<i64: 1, 1>}, {transform_indices = @transform_13, window_bounds = array<i64: 8, 1>}]} {
    %c0 = arith.constant 0 : index
    %c0_0 = arith.constant 0 : index
    %0 = vector.load %arg1[%c0, %c0_0] : memref<8x12xf32, #tpu.memory_space<vmem>>, vector<8x12xf32>
    %1 = arith.truncf %0 : vector<8x12xf32> to vector<8x12xbf16>
    %c0_1 = arith.constant 0 : index
    %c0_2 = arith.constant 0 : index
    %2 = vector.load %arg2[%c0_1, %c0_2] : memref<12x256xbf16, #tpu.memory_space<vmem>>, vector<12x256xbf16>
    %cst = arith.constant dense<0.000000e+00> : vector<8x256xf32>
    %3 = tpu.matmul %1, %2, %cst {dimension_numbers = #tpu.dot_dimension_numbers<[1], [0], [0], [1], [0, 0, 1, 1], [], []>} : vector<8x12xbf16>, vector<12x256xbf16>, vector<8x256xf32> -> vector<8x256xf32>
    %c0_3 = arith.constant 0 : index
    %c0_4 = arith.constant 0 : index
    %4 = vector.load %arg3[%c0_3, %c0_4] : memref<1x256xf32, #tpu.memory_space<vmem>>, vector<1x256xf32>
    %5 = vector.broadcast %4 : vector<1x256xf32> to vector<8x256xf32>
    %6 = arith.addf %3, %5 : vector<8x256xf32>
    %cst_5 = arith.constant 0.000000e+00 : f32
    %7 = vector.broadcast %cst_5 : f32 to vector<8x256xf32>
    %8 = arith.maximumf %6, %7 : vector<8x256xf32>
    %9 = arith.truncf %8 : vector<8x256xf32> to vector<8x256xbf16>
    %c0_6 = arith.constant 0 : index
    %c0_7 = arith.constant 0 : index
    %10 = vector.load %arg4[%c0_6, %c0_7] : memref<256x512xbf16, #tpu.memory_space<vmem>>, vector<256x512xbf16>
    %cst_8 = arith.constant dense<0.000000e+00> : vector<8x512xf32>
    %11 = tpu.matmul %9, %10, %cst_8 {dimension_numbers = #tpu.dot_dimension_numbers<[1], [0], [0], [1], [0, 0, 1, 1], [], []>} : vector<8x256xbf16>, vector<256x512xbf16>, vector<8x512xf32> -> vector<8x512xf32>
    %c0_9 = arith.constant 0 : index
    %c0_10 = arith.constant 0 : index
    %12 = vector.load %arg5[%c0_9, %c0_10] : memref<1x512xf32, #tpu.memory_space<vmem>>, vector<1x512xf32>
    %13 = vector.broadcast %12 : vector<1x512xf32> to vector<8x512xf32>
    %14 = arith.addf %11, %13 : vector<8x512xf32>
    %15 = vector.extract_strided_slice %14 {offsets = [0, 0], sizes = [8, 256], strides = [1, 1]} : vector<8x512xf32> to vector<8x256xf32>
    %16 = vector.extract_strided_slice %14 {offsets = [0, 256], sizes = [8, 256], strides = [1, 1]} : vector<8x512xf32> to vector<8x256xf32>
    %17 = arith.maximumf %15, %16 : vector<8x256xf32>
    %cst_11 = arith.constant 0.000000e+00 : f32
    %18 = vector.broadcast %cst_11 : f32 to vector<8x256xf32>
    %19 = arith.maximumf %17, %18 : vector<8x256xf32>
    %20 = arith.truncf %19 : vector<8x256xf32> to vector<8x256xbf16>
    %c0_12 = arith.constant 0 : index
    %c0_13 = arith.constant 0 : index
    %21 = vector.load %arg6[%c0_12, %c0_13] : memref<256x512xbf16, #tpu.memory_space<vmem>>, vector<256x512xbf16>
    %cst_14 = arith.constant dense<0.000000e+00> : vector<8x512xf32>
    %22 = tpu.matmul %20, %21, %cst_14 {dimension_numbers = #tpu.dot_dimension_numbers<[1], [0], [0], [1], [0, 0, 1, 1], [], []>} : vector<8x256xbf16>, vector<256x512xbf16>, vector<8x512xf32> -> vector<8x512xf32>
    %c0_15 = arith.constant 0 : index
    %c0_16 = arith.constant 0 : index
    %23 = vector.load %arg7[%c0_15, %c0_16] : memref<1x512xf32, #tpu.memory_space<vmem>>, vector<1x512xf32>
    %24 = vector.broadcast %23 : vector<1x512xf32> to vector<8x512xf32>
    %25 = arith.addf %22, %24 : vector<8x512xf32>
    %26 = vector.extract_strided_slice %25 {offsets = [0, 0], sizes = [8, 256], strides = [1, 1]} : vector<8x512xf32> to vector<8x256xf32>
    %27 = vector.extract_strided_slice %25 {offsets = [0, 256], sizes = [8, 256], strides = [1, 1]} : vector<8x512xf32> to vector<8x256xf32>
    %28 = arith.maximumf %26, %27 : vector<8x256xf32>
    %cst_17 = arith.constant 0.000000e+00 : f32
    %29 = vector.broadcast %cst_17 : f32 to vector<8x256xf32>
    %30 = arith.maximumf %28, %29 : vector<8x256xf32>
    %31 = arith.truncf %30 : vector<8x256xf32> to vector<8x256xbf16>
    %c0_18 = arith.constant 0 : index
    %c0_19 = arith.constant 0 : index
    %32 = vector.load %arg8[%c0_18, %c0_19] : memref<256x256xbf16, #tpu.memory_space<vmem>>, vector<256x256xbf16>
    %cst_20 = arith.constant dense<0.000000e+00> : vector<8x256xf32>
    %33 = tpu.matmul %31, %32, %cst_20 {dimension_numbers = #tpu.dot_dimension_numbers<[1], [0], [0], [1], [0, 0, 1, 1], [], []>} : vector<8x256xbf16>, vector<256x256xbf16>, vector<8x256xf32> -> vector<8x256xf32>
    %c0_21 = arith.constant 0 : index
    %c0_22 = arith.constant 0 : index
    %34 = vector.load %arg9[%c0_21, %c0_22] : memref<1x256xf32, #tpu.memory_space<vmem>>, vector<1x256xf32>
    %35 = vector.broadcast %34 : vector<1x256xf32> to vector<8x256xf32>
    %36 = arith.addf %33, %35 : vector<8x256xf32>
    %cst_23 = arith.constant 0.000000e+00 : f32
    %37 = vector.broadcast %cst_23 : f32 to vector<8x256xf32>
    %38 = arith.maximumf %36, %37 : vector<8x256xf32>
    %39 = arith.truncf %38 : vector<8x256xf32> to vector<8x256xbf16>
    %c0_24 = arith.constant 0 : index
    %c0_25 = arith.constant 0 : index
    %40 = vector.load %arg10[%c0_24, %c0_25] : memref<256x128xbf16, #tpu.memory_space<vmem>>, vector<256x128xbf16>
    %cst_26 = arith.constant dense<0.000000e+00> : vector<8x128xf32>
    %41 = tpu.matmul %39, %40, %cst_26 {dimension_numbers = #tpu.dot_dimension_numbers<[1], [0], [0], [1], [0, 0, 1, 1], [], []>} : vector<8x256xbf16>, vector<256x128xbf16>, vector<8x128xf32> -> vector<8x128xf32>
    %c0_27 = arith.constant 0 : index
    %c0_28 = arith.constant 0 : index
    %42 = vector.load %arg11[%c0_27, %c0_28] : memref<1x128xf32, #tpu.memory_space<vmem>>, vector<1x128xf32>
    %43 = vector.broadcast %42 : vector<1x128xf32> to vector<8x128xf32>
    %44 = arith.addf %41, %43 : vector<8x128xf32>
    %cst_29 = arith.constant 0.000000e+00 : f32
    %45 = vector.broadcast %cst_29 : f32 to vector<8x128xf32>
    %46 = arith.maximumf %44, %45 : vector<8x128xf32>
    %c0_30 = arith.constant 0 : index
    %c0_31 = arith.constant 0 : index
    %47 = vector.load %arg12[%c0_30, %c0_31] : memref<1x128xf32, #tpu.memory_space<vmem>>, vector<1x128xf32>
    %48 = vector.broadcast %47 : vector<1x128xf32> to vector<8x128xf32>
    %49 = arith.mulf %46, %48 : vector<8x128xf32>
    %cst_32 = arith.constant dense<0.000000e+00> : vector<8xf32>
    %50 = vector.multi_reduction <add>, %49, %cst_32 [1] : vector<8x128xf32> to vector<8xf32>
    %51 = vector.shape_cast %50 : vector<8xf32> to vector<8x1xf32>
    %c0_33 = arith.constant 0 : index
    %c0_34 = arith.constant 0 : index
    %52 = vector.load %arg13[%c0_33, %c0_34] : memref<1x1xf32, #tpu.memory_space<vmem>>, vector<1x1xf32>
    %53 = vector.broadcast %52 : vector<1x1xf32> to vector<8x1xf32>
    %54 = arith.addf %51, %53 : vector<8x1xf32>
    %c0_35 = arith.constant 0 : index
    %c0_36 = arith.constant 0 : index
    %55 = vector.load %arg14[%c0_35, %c0_36] : memref<8x1xf32, #tpu.memory_space<vmem>>, vector<8x1xf32>
    tpu.vector_store %arg14[%c0_35, %c0_36], %54 {strides = array<i32>} : memref<8x1xf32, #tpu.memory_space<vmem>>, vector<8x1xf32>,
    return
  }
  func.func @transform_0(%arg0: i32) -> (i32, i32) {
    %c0_i32 = arith.constant 0 : i32
    %c0_i32_0 = arith.constant 0 : i32
    return %arg0, %c0_i32 : i32, i32
  }
  func.func @transform_1(%arg0: i32) -> (i32, i32) {
    %c0_i32 = arith.constant 0 : i32
    %c0_i32_0 = arith.constant 0 : i32
    %c0_i32_1 = arith.constant 0 : i32
    return %c0_i32, %c0_i32_0 : i32, i32
  }
  func.func @transform_2(%arg0: i32) -> (i32, i32) {
    %c0_i32 = arith.constant 0 : i32
    %c0_i32_0 = arith.constant 0 : i32
    %c0_i32_1 = arith.constant 0 : i32
    return %c0_i32, %c0_i32_0 : i32, i32
  }
  func.func @transform_3(%arg0: i32) -> (i32, i32) {
    %c0_i32 = arith.constant 0 : i32
    %c0_i32_0 = arith.constant 0 : i32
    %c0_i32_1 = arith.constant 0 : i32
    return %c0_i32, %c0_i32_0 : i32, i32
  }
  func.func @transform_4(%arg0: i32) -> (i32, i32) {
    %c0_i32 = arith.constant 0 : i32
    %c0_i32_0 = arith.constant 0 : i32
    %c0_i32_1 = arith.constant 0 : i32
    return %c0_i32, %c0_i32_0 : i32, i32
  }
  func.func @transform_5(%arg0: i32) -> (i32, i32) {
    %c0_i32 = arith.constant 0 : i32
    %c0_i32_0 = arith.constant 0 : i32
    %c0_i32_1 = arith.constant 0 : i32
    return %c0_i32, %c0_i32_0 : i32, i32
  }
  func.func @transform_6(%arg0: i32) -> (i32, i32) {
    %c0_i32 = arith.constant 0 : i32
    %c0_i32_0 = arith.constant 0 : i32
    %c0_i32_1 = arith.constant 0 : i32
    return %c0_i32, %c0_i32_0 : i32, i32
  }
  func.func @transform_7(%arg0: i32) -> (i32, i32) {
    %c0_i32 = arith.constant 0 : i32
    %c0_i32_0 = arith.constant 0 : i32
    %c0_i32_1 = arith.constant 0 : i32
    return %c0_i32, %c0_i32_0 : i32, i32
  }
  func.func @transform_8(%arg0: i32) -> (i32, i32) {
    %c0_i32 = arith.constant 0 : i32
    %c0_i32_0 = arith.constant 0 : i32
    %c0_i32_1 = arith.constant 0 : i32
    return %c0_i32, %c0_i32_0 : i32, i32
  }
  func.func @transform_9(%arg0: i32) -> (i32, i32) {
    %c0_i32 = arith.constant 0 : i32
    %c0_i32_0 = arith.constant 0 : i32
    %c0_i32_1 = arith.constant 0 : i32
    return %c0_i32, %c0_i32_0 : i32, i32
  }
  func.func @transform_10(%arg0: i32) -> (i32, i32) {
    %c0_i32 = arith.constant 0 : i32
    %c0_i32_0 = arith.constant 0 : i32
    %c0_i32_1 = arith.constant 0 : i32
    return %c0_i32, %c0_i32_0 : i32, i32
  }
  func.func @transform_11(%arg0: i32) -> (i32, i32) {
    %c0_i32 = arith.constant 0 : i32
    %c0_i32_0 = arith.constant 0 : i32
    %c0_i32_1 = arith.constant 0 : i32
    return %c0_i32, %c0_i32_0 : i32, i32
  }
  func.func @transform_12(%arg0: i32) -> (i32, i32) {
    %c0_i32 = arith.constant 0 : i32
    %c0_i32_0 = arith.constant 0 : i32
    %c0_i32_1 = arith.constant 0 : i32
    return %c0_i32, %c0_i32_0 : i32, i32
  }
  func.func @transform_13(%arg0: i32) -> (i32, i32) {
    %c0_i32 = arith.constant 0 : i32
    %c0_i32_0 = arith.constant 0 : i32
    return %arg0, %c0_i32 : i32, i32
  }
}

</mosaic_0001>

<bundles_post_ra>
// kernel: tpu_custom_call.1
= control target key start
LH: loop header
LB: loop body
LE: loop exit
PB: predicated region body
PF: predicated region fallthrough
CT: control target
= control target key end

     0   :  { %s2925_s0 = inlined_call_operand.hbm [shape: f32[8,12], index: 0, kind: input, shape index: {}]   ;;  %s2926_s1 = inlined_call_operand.hbm [shape: bf16[12,256], index: 1, kind: input, shape index: {}]   ;;  %s2927_s2 = inlined_call_operand.hbm [shape: f32[1,256], index: 2, kind: input, shape index: {}]   ;;  %s2928_s3 = inlined_call_operand.hbm [shape: bf16[256,512], index: 3, kind: input, shape index: {}]   ;;  %s2929_s4 = inlined_call_operand.vmem [shape: f32[1,512], index: 4, kind: input, shape index: {}]   ;;  %s2930_s5 = inlined_call_operand.hbm [shape: bf16[256,512], index: 5, kind: input, shape index: {}]   ;;  %s2931_s6 = inlined_call_operand.hbm [shape: f32[1,512], index: 6, kind: input, shape index: {}]   ;;  %s2932_s7 = inlined_call_operand.hbm [shape: bf16[256,256], index: 7, kind: input, shape index: {}]   ;;  %s2933_s8 = inlined_call_operand.vmem [shape: f32[1,256], index: 8, kind: input, shape index: {}]   ;;  %s2934_s9 = inlined_call_operand.hbm [shape: bf16[256,128], index: 9, kind: input, shape index: {}]   ;;  %s2935_s10 = inlined_call_operand.vmem [shape: f32[1,128], index: 10, kind: input, shape index: {}]   ;;  %s2936_s11 = inlined_call_operand.vmem [shape: f32[1,128], index: 11, kind: input, shape index: {}]   ;;  %s2937_s12 = inlined_call_operand.<no memory space> [shape: f32[1,1], index: 12, kind: input, shape index: {}]   ;;  %s2938_s13 = inlined_call_operand.vmem [shape: f32[8,1], index: 13, kind: output, shape index: {}]  }
   0x1   :  { %v18_v0 = vstv %s2937_s12 }
   0x2   :  { %19 = vst [vmem:[#allocation2] sm:$0x1] %v18_v0 }
   0x3   :  { %20 = vsyncpa [#allocation4], 0 }
   0x4   :  { %21 = vsyncpa [#allocation6], 0 }
   0x5   :  { %22 = vsyncpa [#allocation9], 0 }
   0x6   :  { %23 = vsyncpa [#allocation12], 0  ;;  %s40_s29 = sshll.u32 %s2926_s1, 4  ;;  %s41_s29 = int_to_ptr.hbm [resolvable:$true] %s40_s29 }
   0x7   :  { %24 = vsyncpa [#allocation15], 0  ;;  %s2780_s30 = smov [#allocation5]   ;;  %s64_s17 = sshll.u32 %s2928_s3, 4  ;;  %s65_s17 = int_to_ptr.hbm [resolvable:$true] %s64_s17 }
   0x8   :  { %s42_s14 = sshll.u32 %s2780_s30, 4  ;;  %s2781_s18 = smov 128   ;;  %s43_s14 = int_to_ptr.vmem [resolvable:$true] %s42_s14 }
   0x9   :  { %s2782_s12 = smov 8   ;;  %s2783_s19 = smov [#allocation8]  }
   0xa   :  { %48 = dma.hbm_to_vmem [thread:$0]  %s41_s29, 256, %s43_s14, [#allocation6], %s2781_s18, %s2781_s18, %s2782_s12  }
   0xb   :  { %s66_s20 = sshll.u32 %s2783_s19, 4  ;;  %s2784_s1 = smov 256   ;;  %s67_s20 = int_to_ptr.vmem [resolvable:$true] %s66_s20 }
   0xc   :  { %s2785_s21 = smov 16   ;;  %s93_s3 = sshll.u32 %s2931_s6, 4  ;;  %s94_s3 = int_to_ptr.hbm [resolvable:$true] %s93_s3 }
   0xd   :  { %72 = dma.hbm_to_vmem [thread:$0]  %s65_s17, 8192, %s67_s20, [#allocation9], %s2784_s1, %s2784_s1, %s2785_s21  }
   0xe   :  { %s2786_s24 = smov [#allocation11]   ;;  %s30_s28 = sshll.u32 %s2925_s0, 4  ;;  %s31_s28 = int_to_ptr.hbm [resolvable:$true] %s30_s28 }
   0xf   :  { %s95_s25 = sshll.u32 %s2786_s24, 4  ;;  %s2787_s29 = smov [#allocation3]   ;;  %s96_s25 = int_to_ptr.vmem [resolvable:$true] %s95_s25 }
  0x10   :  { %98 = dma.hbm_to_vmem [thread:$0]  %s94_s3, 64, %s96_s25, [#allocation12]  }
  0x11   :  { %s32_s30 = sshll.u32 %s2787_s29, 4  ;;  %s54_s16 = sshll.u32 %s2927_s2, 4  ;;  %s33_s30 = int_to_ptr.vmem [resolvable:$true] %s32_s30  ;;  %s55_s16 = int_to_ptr.hbm [resolvable:$true] %s54_s16 }
  0x12   :  { %35 = dma.hbm_to_vmem [thread:$0]  %s31_s28, 128, %s33_s30, [#allocation4]  }
  0x13   :  { %s79_s19 = sshll.u32 %s2930_s5, 4  ;;  %s2788_s20 = smov [#allocation7]   ;;  %s80_s19 = int_to_ptr.hbm [resolvable:$true] %s79_s19 }
  0x14   :  { %s56_s22 = sshll.u32 %s2788_s20, 4  ;;  %s2789_s0 = smov [#allocation10]   ;;  %s57_s22 = int_to_ptr.vmem [resolvable:$true] %s56_s22 }
  0x15   :  { %59 = dma.hbm_to_vmem [thread:$0]  %s55_s16, 32, %s57_s22, [#allocation6]  }
  0x16   :  { %s81_s23 = sshll.u32 %s2789_s0, 4  ;;  %s103_s25 = sshll.u32 %s2932_s7, 4  ;;  %s82_s23 = int_to_ptr.vmem [resolvable:$true] %s81_s23  ;;  %s104_s25 = int_to_ptr.hbm [resolvable:$true] %s103_s25 }
  0x17   :  { %87 = dma.hbm_to_vmem [thread:$0]  %s80_s19, 8192, %s82_s23, [#allocation9], %s2784_s1, %s2784_s1, %s2785_s21  }
  0x18   :  { %s118_s5 = sshll.u32 %s2934_s9, 4  ;;  %s2790_s27 = smov [#allocation13]   ;;  %s119_s5 = int_to_ptr.hbm [resolvable:$true] %s118_s5 }
  0x19   :  { %s105_s28 = sshll.u32 %s2790_s27, 4  ;;  %s2791_s29 = smov [#allocation14]   ;;  %s106_s28 = int_to_ptr.vmem [resolvable:$true] %s105_s28 }
  0x1a   :  { %111 = dma.hbm_to_vmem [thread:$0]  %s104_s25, 4096, %s106_s28, [#allocation12], %s2781_s18, %s2781_s18, %s2782_s12  }
  0x1b   :  { %s120_s7 = sshll.u32 %s2791_s29, 4  ;;  %s2792_s30 = smov 64   ;;  %s121_s7 = int_to_ptr.vmem [resolvable:$true] %s120_s7 }
  0x1c   :  { %s2793_s14 = smov 4  }
  0x1d   :  { %126 = dma.hbm_to_vmem [thread:$0]  %s119_s5, 2048, %s121_s7, [#allocation15], %s2792_s30, %s2792_s30, %s2793_s14  }
  0x1e   :  { %2770 = dma.done.wait [#allocation4], 128  }
  0x1f   :  { %2771 = vsyncadd [#allocation4], 4294967168 }
  0x20   :  { %2772 = dma.done.wait [#allocation6], 288  }
  0x21   :  { %2773 = vsyncadd [#allocation6], 4294967008 }
  0x22   :  { %2774 = dma.done.wait [#allocation9], 16384  }
  0x23   :  { %2775 = vsyncadd [#allocation9], 4294950912 }
  0x24   :  { %2776 = dma.done.wait [#allocation12], 4160  }
  0x25   :  { %2777 = vsyncadd [#allocation12], 4294963136 }
  0x26   :  { %2778 = dma.done.wait [#allocation15], 2048  }
  0x27   :  { %2779 = vsyncadd [#allocation15], 4294965248  ;;  %vm188_vm0 = vcmask 1045504   ;;  %v1671_v1 = vld [vmem:[#allocation5] sm:$0xf]  ;;  %v166_v6 = vld [vmem:[#allocation3] sm:$0xff] }
  0x28   :  { %v2384_v2 = vld [vmem:[#allocation5 + $0x4] sm:$0x30]  ;;  %v2383_v3 = vld [vmem:[#allocation5 + $0x4] sm:$0xf]  ;;  %v1673_v5 = vld [vmem:[#allocation5 + $0x8] sm:$0x30]  ;;  %v167_v13 = vpack.c.bf16 %v166_v6, %v166_v6 }
  0x29   :  { %v1672_v4 = vor.u32 %v2384_v2, %v1671_v1  ;;  %v1793_v7 = vld [vmem:[#allocation8 + $0xe0] sm:$0xf]  ;;  %v1676_v8 = vor.u32 %v2383_v3, %v1673_v5  ;;  %v2415_v9 = vld [vmem:[#allocation8 + $0xec] sm:$0xf0]  ;;  %v2413_v16 = vld [vmem:[#allocation8 + $0xe4] sm:$0xf] }
  0x2a   :  { %v1921_v10 = vld [vmem:[#allocation8 + $0x1e0] sm:$0xf]  ;;  %v2447_v11 = vld [vmem:[#allocation8 + $0x1ec] sm:$0xf0]  ;;  %v1794_v14 = vor.u32 %v2415_v9, %v1793_v7  ;;  %v1795_v17 = vld [vmem:[#allocation8 + $0xf0] sm:$0xf0] }
  0x2b   :  { %v190_v12 = vsel %vm188_vm0, %v1672_v4, 0  ;;  %v1922_v15 = vor.u32 %v2447_v11, %v1921_v10  ;;  %v193_v18 = vsel %vm188_vm0, %v1676_v8, 0  ;;  %vm184_vm1 = vcmask 97280   ;;  %v2445_v20 = vld [vmem:[#allocation8 + $0x1e4] sm:$0xf] }
  0x2c   :  { %202 = vmatpush.bf16.msra.mxu0 %v190_v12  ;;  %v1798_v19 = vor.u32 %v2413_v16, %v1795_v17  ;;  %v1923_v21 = vld [vmem:[#allocation8 + $0x1f0] sm:$0xf0]  ;;  %215 = vmatpush.bf16.msra.mxu1 %v193_v18  ;;  %v1777_v23 = vld [vmem:[#allocation8 + $0xc0] sm:$0xf]  ;;  %v2411_v24 = vld [vmem:[#allocation8 + $0xcc] sm:$0xf0] }
  0x2d   :  { %619 = vmatpush.bf16.msra.mxu2 %v1794_v14  ;;  %v1926_v22 = vor.u32 %v2445_v20, %v1923_v21  ;;  %v1905_v25 = vld [vmem:[#allocation8 + $0x1c0] sm:$0xf]  ;;  %632 = vmatpush.bf16.msra.mxu3 %v1922_v15  ;;  %v1778_v26 = vor.u32 %v2411_v24, %v1777_v23  ;;  %v2443_v27 = vld [vmem:[#allocation8 + $0x1cc] sm:$0xf0]  ;;  %v2409_v28 = vld [vmem:[#allocation8 + $0xc4] sm:$0xf] }
  0x2e   :  { %v1779_v29 = vld [vmem:[#allocation8 + $0xd0] sm:$0xf0]  ;;  %v1906_v30 = vor.u32 %v2443_v27, %v1905_v25  ;;  %v2441_v32 = vld [vmem:[#allocation8 + $0x1c4] sm:$0xf]  ;;  %v1761_v34 = vld [vmem:[#allocation8 + $0xa0] sm:$0xf] }
  0x2f   :  { %1677 = vmatmul.msk.bf16.vlgmr.msra.gmra.mxu0 %vm184_vm1, %v167_v13  ;;  %v1782_v31 = vor.u32 %v2409_v28, %v1779_v29  ;;  %v1907_v33 = vld [vmem:[#allocation8 + $0x1d0] sm:$0xf0]  ;;  %1678 = vmatmul.msk.bf16.vlgmr.msra.gmra.mxu1 %vm184_vm1, %v167_v13  ;;  %v2407_v36 = vld [vmem:[#allocation8 + $0xac] sm:$0xf0]  ;;  %v1889_v37 = vld [vmem:[#allocation8 + $0x1a0] sm:$0xf] }
  0x30   :  { %645 = vmatpush.bf16.msrb.mxu0 %v1798_v19  ;;  %658 = vmatpush.bf16.msrb.mxu1 %v1926_v22  ;;  %v1910_v35 = vor.u32 %v2441_v32, %v1907_v33  ;;  %v2439_v38 = vld [vmem:[#allocation8 + $0x1ac] sm:$0xf0]  ;;  %v1762_v39 = vor.u32 %v2407_v36, %v1761_v34  ;;  %v2405_v40 = vld [vmem:[#allocation8 + $0xa4] sm:$0xf]  ;;  %v1763_v41 = vld [vmem:[#allocation8 + $0xb0] sm:$0xf0] }
  0x31   :  { %620 = vmatpush.bf16.msra.mxu2 %v1778_v26  ;;  %v2437_v42 = vld [vmem:[#allocation8 + $0x1a4] sm:$0xf]  ;;  %633 = vmatpush.bf16.msra.mxu3 %v1906_v30  ;;  %v1890_v43 = vor.u32 %v2439_v38, %v1889_v37  ;;  %v1766_v44 = vor.u32 %v2405_v40, %v1763_v41  ;;  %v1891_v45 = vld [vmem:[#allocation8 + $0x1b0] sm:$0xf0]  ;;  %v1745_v46 = vld [vmem:[#allocation8 + $0x80] sm:$0xf] }
  0x32   :  { %v2403_v47 = vld [vmem:[#allocation8 + $0x8c] sm:$0xf0]  ;;  %v1894_v48 = vor.u32 %v2437_v42, %v1891_v45  ;;  %v1873_v49 = vld [vmem:[#allocation8 + $0x180] sm:$0xf]  ;;  %v2401_v51 = vld [vmem:[#allocation8 + $0x84] sm:$0xf] }
  0x33   :  { %v2435_v50 = vld [vmem:[#allocation8 + $0x18c] sm:$0xf0]  ;;  %v1747_v52 = vld [vmem:[#allocation8 + $0x90] sm:$0xf0]  ;;  %v2433_v53 = vld [vmem:[#allocation8 + $0x184] sm:$0xf]  ;;  %v1746_v55 = vor.u32 %v2403_v47, %v1745_v46 }
  0x34   :  { %646 = vmatpush.bf16.msrb.mxu0 %v1782_v31  ;;  %659 = vmatpush.bf16.msrb.mxu1 %v1910_v35  ;;  %v1875_v54 = vld [vmem:[#allocation8 + $0x190] sm:$0xf0]  ;;  %v1874_v56 = vor.u32 %v2435_v50, %v1873_v49  ;;  %v1750_v57 = vor.u32 %v2401_v51, %v1747_v52  ;;  %v1729_v58 = vld [vmem:[#allocation8 + $0x60] sm:$0xf]  ;;  %v2399_v59 = vld [vmem:[#allocation8 + $0x6c] sm:$0xf0] }
  0x35   :  { %621 = vmatpush.bf16.msra.mxu2 %v1762_v39  ;;  %634 = vmatpush.bf16.msra.mxu3 %v1890_v43  ;;  %v1857_v60 = vld [vmem:[#allocation8 + $0x160] sm:$0xf]  ;;  %v1878_v61 = vor.u32 %v2433_v53, %v1875_v54  ;;  %v2431_v62 = vld [vmem:[#allocation8 + $0x16c] sm:$0xf0]  ;;  %v2397_v63 = vld [vmem:[#allocation8 + $0x64] sm:$0xf]  ;;  %v1730_v3 = vor.u32 %v2399_v59, %v1729_v58 }
  0x36   :  { %v1731_v0 = vld [vmem:[#allocation8 + $0x70] sm:$0xf0]  ;;  %v2429_v1 = vld [vmem:[#allocation8 + $0x164] sm:$0xf]  ;;  %v1858_v4 = vor.u32 %v2431_v62, %v1857_v60  ;;  %v1713_v6 = vld [vmem:[#allocation8 + $0x40] sm:$0xf] }
  0x37   :  { %v1859_v2 = vld [vmem:[#allocation8 + $0x170] sm:$0xf0]  ;;  %v1734_v5 = vor.u32 %v2397_v63, %v1731_v0  ;;  %v2395_v7 = vld [vmem:[#allocation8 + $0x4c] sm:$0xf0]  ;;  %v1841_v8 = vld [vmem:[#allocation8 + $0x140] sm:$0xf] }
  0x38   :  { %647 = vmatpush.bf16.msrb.mxu0 %v1766_v44  ;;  %660 = vmatpush.bf16.msrb.mxu1 %v1894_v48  ;;  %v1862_v9 = vor.u32 %v2429_v1, %v1859_v2  ;;  %v2427_v10 = vld [vmem:[#allocation8 + $0x14c] sm:$0xf0]  ;;  %v2393_v11 = vld [vmem:[#allocation8 + $0x44] sm:$0xf]  ;;  %v1715_v12 = vld [vmem:[#allocation8 + $0x50] sm:$0xf0]  ;;  %v1714_v15 = vor.u32 %v2395_v7, %v1713_v6 }
  0x39   :  { %622 = vmatpush.bf16.msra.mxu2 %v1746_v55  ;;  %635 = vmatpush.bf16.msra.mxu3 %v1874_v56  ;;  %v2425_v13 = vld [vmem:[#allocation8 + $0x144] sm:$0xf]  ;;  %v1843_v14 = vld [vmem:[#allocation8 + $0x150] sm:$0xf0]  ;;  %v1842_v16 = vor.u32 %v2427_v10, %v1841_v8  ;;  %v1718_v17 = vor.u32 %v2393_v11, %v1715_v12  ;;  %v1697_v18 = vld [vmem:[#allocation8 + $0x20] sm:$0xf] }
  0x3a   :  { %v2391_v19 = vld [vmem:[#allocation8 + $0x2c] sm:$0xf0]  ;;  %v1825_v20 = vld [vmem:[#allocation8 + $0x120] sm:$0xf]  ;;  %v1846_v21 = vor.u32 %v2425_v13, %v1843_v14  ;;  %v2389_v23 = vld [vmem:[#allocation8 + $0x24] sm:$0xf] }
  0x3b   :  { %v2423_v22 = vld [vmem:[#allocation8 + $0x12c] sm:$0xf0]  ;;  %v1699_v24 = vld [vmem:[#allocation8 + $0x30] sm:$0xf0]  ;;  %v2421_v25 = vld [vmem:[#allocation8 + $0x124] sm:$0xf]  ;;  %v1698_v28 = vor.u32 %v2391_v19, %v1697_v18 }
  0x3c   :  { %648 = vmatpush.bf16.msrb.mxu0 %v1750_v57  ;;  %661 = vmatpush.bf16.msrb.mxu1 %v1878_v61  ;;  %v1827_v26 = vld [vmem:[#allocation8 + $0x130] sm:$0xf0]  ;;  %v1681_v27 = vld [vmem:[#allocation8] sm:$0xf]  ;;  %v2387_v29 = vld [vmem:[#allocation8 + $0xc] sm:$0xf0]  ;;  %v1826_v32 = vor.u32 %v2423_v22, %v1825_v20  ;;  %v1702_v33 = vor.u32 %v2389_v23, %v1699_v24 }
  0x3d   :  { %623 = vmatpush.bf16.msra.mxu2 %v1730_v3  ;;  %636 = vmatpush.bf16.msra.mxu3 %v1858_v4  ;;  %v1809_v30 = vld [vmem:[#allocation8 + $0x100] sm:$0xf]  ;;  %v2419_v31 = vld [vmem:[#allocation8 + $0x10c] sm:$0xf0]  ;;  %v2385_v34 = vld [vmem:[#allocation8 + $0x4] sm:$0xf]  ;;  %v1830_v37 = vor.u32 %v2421_v25, %v1827_v26  ;;  %v1682_v44 = vor.u32 %v2387_v29, %v1681_v27 }
  0x3e   :  { %v1683_v35 = vld [vmem:[#allocation8 + $0x10] sm:$0xf0]  ;;  %v2417_v36 = vld [vmem:[#allocation8 + $0x104] sm:$0xf]  ;;  %v1801_v39 = vld [vmem:[#allocation8 + $0xe8] sm:$0xf]  ;;  %v1810_v46 = vor.u32 %v2419_v31, %v1809_v30 }
  0x3f   :  { %v1811_v38 = vld [vmem:[#allocation8 + $0x110] sm:$0xf0]  ;;  %v2416_v40 = vld [vmem:[#allocation8 + $0xf4] sm:$0xf0]  ;;  %v1929_v41 = vld [vmem:[#allocation8 + $0x1e8] sm:$0xf]  ;;  %v1686_v47 = vor.u32 %v2385_v34, %v1683_v35 }
  0x40   :  { %649 = vmatpush.bf16.msrb.mxu0 %v1734_v5  ;;  %662 = vmatpush.bf16.msrb.mxu1 %v1862_v9  ;;  %v2448_v42 = vld [vmem:[#allocation8 + $0x1f4] sm:$0xf0]  ;;  %v2414_v43 = vld [vmem:[#allocation8 + $0xec] sm:$0xf]  ;;  %v1803_v45 = vld [vmem:[#allocation8 + $0xf8] sm:$0xf0]  ;;  %v1814_v50 = vor.u32 %v2417_v36, %v1811_v38  ;;  %v1802_v51 = vor.u32 %v2416_v40, %v1801_v39 }
  0x41   :  { %624 = vmatpush.bf16.msra.mxu2 %v1714_v15  ;;  %637 = vmatpush.bf16.msra.mxu3 %v1842_v16  ;;  %v2446_v48 = vld [vmem:[#allocation8 + $0x1ec] sm:$0xf]  ;;  %v1931_v49 = vld [vmem:[#allocation8 + $0x1f8] sm:$0xf0]  ;;  %v1930_v52 = vor.u32 %v2448_v42, %v1929_v41  ;;  %v1806_v53 = vor.u32 %v2414_v43, %v1803_v45  ;;  %v1785_v54 = vld [vmem:[#allocation8 + $0xc8] sm:$0xf] }
  0x42   :  { %v2412_v55 = vld [vmem:[#allocation8 + $0xd4] sm:$0xf0]  ;;  %v1913_v56 = vld [vmem:[#allocation8 + $0x1c8] sm:$0xf]  ;;  %v1934_v57 = vor.u32 %v2446_v48, %v1931_v49  ;;  %v2410_v59 = vld [vmem:[#allocation8 + $0xcc] sm:$0xf] }
  0x43   :  { %v2444_v58 = vld [vmem:[#allocation8 + $0x1d4] sm:$0xf0]  ;;  %v1787_v60 = vld [vmem:[#allocation8 + $0xd8] sm:$0xf0]  ;;  %v2442_v61 = vld [vmem:[#allocation8 + $0x1cc] sm:$0xf]  ;;  %v1786_v63 = vor.u32 %v2412_v55, %v1785_v54 }
  0x44   :  { %650 = vmatpush.bf16.msrb.mxu0 %v1718_v17  ;;  %663 = vmatpush.bf16.msrb.mxu1 %v1846_v21  ;;  %v1915_v62 = vld [vmem:[#allocation8 + $0x1d8] sm:$0xf0]  ;;  %v1914_v0 = vor.u32 %v2444_v58, %v1913_v56  ;;  %v1790_v1 = vor.u32 %v2410_v59, %v1787_v60  ;;  %v1769_v3 = vld [vmem:[#allocation8 + $0xa8] sm:$0xf]  ;;  %v2408_v4 = vld [vmem:[#allocation8 + $0xb4] sm:$0xf0] }
  0x45   :  { %625 = vmatpush.bf16.msra.mxu2 %v1698_v28  ;;  %638 = vmatpush.bf16.msra.mxu3 %v1826_v32  ;;  %v1918_v2 = vor.u32 %v2442_v61, %v1915_v62  ;;  %v1897_v5 = vld [vmem:[#allocation8 + $0x1a8] sm:$0xf]  ;;  %v1770_v6 = vor.u32 %v2408_v4, %v1769_v3  ;;  %v2440_v7 = vld [vmem:[#allocation8 + $0x1b4] sm:$0xf0]  ;;  %v2406_v8 = vld [vmem:[#allocation8 + $0xac] sm:$0xf] }
  0x46   :  { %v1771_v9 = vld [vmem:[#allocation8 + $0xb8] sm:$0xf0]  ;;  %v1898_v10 = vor.u32 %v2440_v7, %v1897_v5  ;;  %v2438_v12 = vld [vmem:[#allocation8 + $0x1ac] sm:$0xf]  ;;  %v1753_v15 = vld [vmem:[#allocation8 + $0x88] sm:$0xf] }
  0x47   :  { %v1774_v11 = vor.u32 %v2406_v8, %v1771_v9  ;;  %v1899_v13 = vld [vmem:[#allocation8 + $0x1b8] sm:$0xf0]  ;;  %v2404_v16 = vld [vmem:[#allocation8 + $0x94] sm:$0xf0]  ;;  %v1881_v17 = vld [vmem:[#allocation8 + $0x188] sm:$0xf] }
  0x48   :  { %651 = vmatpush.bf16.msrb.mxu0 %v1702_v33  ;;  %664 = vmatpush.bf16.msrb.mxu1 %v1830_v37  ;;  %v1902_v14 = vor.u32 %v2438_v12, %v1899_v13  ;;  %v1754_v18 = vor.u32 %v2404_v16, %v1753_v15  ;;  %v2436_v19 = vld [vmem:[#allocation8 + $0x194] sm:$0xf0]  ;;  %v2402_v20 = vld [vmem:[#allocation8 + $0x8c] sm:$0xf]  ;;  %v1755_v21 = vld [vmem:[#allocation8 + $0x98] sm:$0xf0] }
  0x49   :  { %626 = vmatpush.bf16.msra.mxu2 %v1682_v44  ;;  %639 = vmatpush.bf16.msra.mxu3 %v1810_v46  ;;  %v1882_v22 = vor.u32 %v2436_v19, %v1881_v17  ;;  %v1758_v23 = vor.u32 %v2402_v20, %v1755_v21  ;;  %v2434_v24 = vld [vmem:[#allocation8 + $0x18c] sm:$0xf]  ;;  %v1883_v25 = vld [vmem:[#allocation8 + $0x198] sm:$0xf0]  ;;  %v1737_v27 = vld [vmem:[#allocation8 + $0x68] sm:$0xf] }
  0x4a   :  { %v1886_v26 = vor.u32 %v2434_v24, %v1883_v25  ;;  %v2400_v28 = vld [vmem:[#allocation8 + $0x74] sm:$0xf0]  ;;  %v1865_v29 = vld [vmem:[#allocation8 + $0x168] sm:$0xf]  ;;  %v2398_v32 = vld [vmem:[#allocation8 + $0x6c] sm:$0xf] }
  0x4b   :  { %v1738_v30 = vor.u32 %v2400_v28, %v1737_v27  ;;  %v2432_v31 = vld [vmem:[#allocation8 + $0x174] sm:$0xf0]  ;;  %v1739_v33 = vld [vmem:[#allocation8 + $0x78] sm:$0xf0]  ;;  %v2430_v36 = vld [vmem:[#allocation8 + $0x16c] sm:$0xf] }
  0x4c   :  { %652 = vmatpush.bf16.msrb.mxu0 %v1686_v47  ;;  %665 = vmatpush.bf16.msrb.mxu1 %v1814_v50  ;;  %v1866_v34 = vor.u32 %v2432_v31, %v1865_v29  ;;  %v1742_v35 = vor.u32 %v2398_v32, %v1739_v33  ;;  %v1867_v37 = vld [vmem:[#allocation8 + $0x178] sm:$0xf0]  ;;  %v1721_v39 = vld [vmem:[#allocation8 + $0x48] sm:$0xf]  ;;  %v2396_v40 = vld [vmem:[#allocation8 + $0x54] sm:$0xf0] }
  0x4d   :  { %671 = vmatpush.bf16.msrb.mxu2 %v1802_v51  ;;  %684 = vmatpush.bf16.msrb.mxu3 %v1930_v52  ;;  %v1870_v38 = vor.u32 %v2430_v36, %v1867_v37  ;;  %v1849_v41 = vld [vmem:[#allocation8 + $0x148] sm:$0xf]  ;;  %v1722_v42 = vor.u32 %v2396_v40, %v1721_v39  ;;  %v2428_v43 = vld [vmem:[#allocation8 + $0x154] sm:$0xf0]  ;;  %v2394_v44 = vld [vmem:[#allocation8 + $0x4c] sm:$0xf] }
  0x4e   :  { %v1723_v45 = vld [vmem:[#allocation8 + $0x58] sm:$0xf0]  ;;  %v1850_v46 = vor.u32 %v2428_v43, %v1849_v41  ;;  %v2426_v48 = vld [vmem:[#allocation8 + $0x14c] sm:$0xf]  ;;  %v1705_v50 = vld [vmem:[#allocation8 + $0x28] sm:$0xf] }
  0x4f   :  { %v1726_v47 = vor.u32 %v2394_v44, %v1723_v45  ;;  %v1851_v49 = vld [vmem:[#allocation8 + $0x158] sm:$0xf0]  ;;  %v2392_v52 = vld [vmem:[#allocation8 + $0x34] sm:$0xf0]  ;;  %v2390_v56 = vld [vmem:[#allocation8 + $0x2c] sm:$0xf] }
  0x50   :  { %697 = vmatpush.bf16.msra.mxu0 %v1806_v53  ;;  %710 = vmatpush.bf16.msra.mxu1 %v1934_v57  ;;  %v1854_v51 = vor.u32 %v2426_v48, %v1851_v49  ;;  %v1833_v53 = vld [vmem:[#allocation8 + $0x128] sm:$0xf]  ;;  %v2424_v54 = vld [vmem:[#allocation8 + $0x134] sm:$0xf0]  ;;  %v1706_v55 = vor.u32 %v2392_v52, %v1705_v50  ;;  %v1707_v57 = vld [vmem:[#allocation8 + $0x38] sm:$0xf0] }
  0x51   :  { %672 = vmatpush.bf16.msrb.mxu2 %v1786_v63  ;;  %685 = vmatpush.bf16.msrb.mxu3 %v1914_v0  ;;  %v2422_v58 = vld [vmem:[#allocation8 + $0x12c] sm:$0xf]  ;;  %v1834_v59 = vor.u32 %v2424_v54, %v1833_v53  ;;  %v1710_v60 = vor.u32 %v2390_v56, %v1707_v57  ;;  %v1835_v61 = vld [vmem:[#allocation8 + $0x138] sm:$0xf0]  ;;  %v1689_v62 = vld [vmem:[#allocation8 + $0x8] sm:$0xf] }
  0x52   :  { %v2388_v63 = vld [vmem:[#allocation8 + $0x14] sm:$0xf0]  ;;  %v1838_v0 = vor.u32 %v2422_v58, %v1835_v61  ;;  %v2386_v3 = vld [vmem:[#allocation8 + $0xc] sm:$0xf]  ;;  %v1691_v4 = vld [vmem:[#allocation8 + $0x18] sm:$0xf0] }
  0x53   :  { %v2418_v5 = vld [vmem:[#allocation8 + $0x10c] sm:$0xf]  ;;  %v1690_v7 = vor.u32 %v2388_v63, %v1689_v62  ;;  %v1694_v9 = vor.u32 %v2386_v3, %v1691_v4  ;;  %v2177_v17 = vld [vmem:[#allocation10 + $0x1e0] sm:$0xf]  ;;  %v2509_v19 = vld [vmem:[#allocation10 + $0x1e4] sm:$0xf] }
  0x54   :  { %698 = vmatpush.bf16.msra.mxu0 %v1790_v1  ;;  %711 = vmatpush.bf16.msra.mxu1 %v1918_v2  ;;  %v1817_v1 = vld [vmem:[#allocation8 + $0x108] sm:$0xf]  ;;  %v2420_v2 = vld [vmem:[#allocation8 + $0x114] sm:$0xf0]  ;;  %v2179_v21 = vld [vmem:[#allocation10 + $0x1f0] sm:$0xf0] }
  0x55   :  { %673 = vmatpush.bf16.msrb.mxu2 %v1770_v6  ;;  %686 = vmatpush.bf16.msrb.mxu3 %v1898_v10  ;;  %v1819_v6 = vld [vmem:[#allocation8 + $0x118] sm:$0xf0]  ;;  %v1818_v8 = vor.u32 %v2420_v2, %v1817_v1  ;;  %v2477_v25 = vld [vmem:[#allocation10 + $0xe4] sm:$0xf]  ;;  %v2161_v31 = vld [vmem:[#allocation10 + $0x1c0] sm:$0xf] }
  0x56   :  { %v1822_v10 = vor.u32 %v2418_v5, %v1819_v6  ;;  %v2507_v32 = vld [vmem:[#allocation10 + $0x1cc] sm:$0xf0]  ;;  %v2473_v40 = vld [vmem:[#allocation10 + $0xc4] sm:$0xf]  ;;  %v2035_v41 = vld [vmem:[#allocation10 + $0xd0] sm:$0xf0] }
  0x57   :  { %v2475_v39 = vld [vmem:[#allocation10 + $0xcc] sm:$0xf0]  ;;  %v2162_v44 = vor.u32 %v2507_v32, %v2161_v31  ;;  %v2501_v48 = vld [vmem:[#allocation10 + $0x1a4] sm:$0xf]  ;;  %v2147_v49 = vld [vmem:[#allocation10 + $0x1b0] sm:$0xf0] }
  0x58   :  { %699 = vmatpush.bf16.msra.mxu0 %v1774_v11  ;;  %712 = vmatpush.bf16.msra.mxu1 %v1902_v14  ;;  %v170_v11 = vld [vmem:[#allocation7] sm:$0x3]  ;;  %v2017_v52 = vld [vmem:[#allocation10 + $0xa0] sm:$0xf]  ;;  %v2471_v53 = vld [vmem:[#allocation10 + $0xac] sm:$0xf0]  ;;  %v2150_v57 = vor.u32 %v2501_v48, %v2147_v49 }
  0x59   :  { %674 = vmatpush.bf16.msrb.mxu2 %v1754_v18  ;;  %687 = vmatpush.bf16.msrb.mxu3 %v1882_v22  ;;  %v172_v12 = vperm.slane %v170_v11, 0  ;;  %v173_v13 = vperm.slane %v170_v11, 1  ;;  %v2511_v18 = vld [vmem:[#allocation10 + $0x1ec] sm:$0xf0]  ;;  %v2049_v22 = vld [vmem:[#allocation10 + $0xe0] sm:$0xf]  ;;  %v2018_v62 = vor.u32 %v2471_v53, %v2017_v52 }
  0x5a   :  { %v2178_v29 = vor.u32 %v2511_v18, %v2177_v17  ;;  %v2469_v54 = vld [vmem:[#allocation10 + $0xa4] sm:$0xf]  ;;  %v2129_v58 = vld [vmem:[#allocation10 + $0x180] sm:$0xf]  ;;  %v2131_v61 = vld [vmem:[#allocation10 + $0x190] sm:$0xf0] }
  0x5b   :  { %v2113_v2 = vld [vmem:[#allocation10 + $0x160] sm:$0xf]  ;;  %v2495_v3 = vld [vmem:[#allocation10 + $0x16c] sm:$0xf0]  ;;  %v2493_v4 = vld [vmem:[#allocation10 + $0x164] sm:$0xf] }
  0x5c   :  { %700 = vmatpush.bf16.msra.mxu0 %v1758_v23  ;;  %713 = vmatpush.bf16.msra.mxu1 %v1886_v26  ;;  %v2479_v23 = vld [vmem:[#allocation10 + $0xec] sm:$0xf0]  ;;  %v2051_v26 = vld [vmem:[#allocation10 + $0xf0] sm:$0xf0]  ;;  %v2114_v6 = vor.u32 %v2495_v3, %v2113_v2  ;;  %v1969_v32 = vld [vmem:[#allocation10 + $0x40] sm:$0xf] }
  0x5d   :  { %675 = vmatpush.bf16.msrb.mxu2 %v1738_v30  ;;  %688 = vmatpush.bf16.msrb.mxu3 %v1866_v34  ;;  %v2182_v30 = vor.u32 %v2509_v19, %v2179_v21  ;;  %v2505_v34 = vld [vmem:[#allocation10 + $0x1c4] sm:$0xf]  ;;  %v2050_v36 = vor.u32 %v2479_v23, %v2049_v22  ;;  %v2054_v37 = vor.u32 %v2477_v25, %v2051_v26  ;;  %v2115_v5 = vld [vmem:[#allocation10 + $0x170] sm:$0xf0]  ;;  %v2463_v21 = vld [vmem:[#allocation10 + $0x6c] sm:$0xf0] }
  0x5e   :  { %v2099_v18 = vld [vmem:[#allocation10 + $0x150] sm:$0xf0]  ;;  %v2461_v22 = vld [vmem:[#allocation10 + $0x64] sm:$0xf]  ;;  %v2081_v26 = vld [vmem:[#allocation10 + $0x120] sm:$0xf] }
  0x5f   :  { %v2187_v48 = vld [vmem:[#allocation10 + $0x1f8] sm:$0xf0]  ;;  %v1953_v49 = vld [vmem:[#allocation10 + $0x20] sm:$0xf]  ;;  %v2453_v52 = vld [vmem:[#allocation10 + $0x24] sm:$0xf] }
  0x60   :  { %701 = vmatpush.bf16.msra.mxu0 %v1742_v35  ;;  %714 = vmatpush.bf16.msra.mxu1 %v1870_v38  ;;  %v2163_v35 = vld [vmem:[#allocation10 + $0x1d0] sm:$0xf0]  ;;  %v2033_v38 = vld [vmem:[#allocation10 + $0xc0] sm:$0xf]  ;;  %vm1658_vm2 = vcmask 7168  }
  0x61   :  { %676 = vmatpush.bf16.msrb.mxu2 %v1722_v42  ;;  %689 = vmatpush.bf16.msrb.mxu3 %v1850_v46  ;;  %v2166_v45 = vor.u32 %v2505_v34, %v2163_v35  ;;  %v2145_v46 = vld [vmem:[#allocation10 + $0x1a0] sm:$0xf]  ;;  %v2034_v50 = vor.u32 %v2475_v39, %v2033_v38  ;;  %v2457_v34 = vld [vmem:[#allocation10 + $0x44] sm:$0xf]  ;;  %v2483_v39 = vld [vmem:[#allocation10 + $0x10c] sm:$0xf0] }
  0x62   :  { %v2065_v38 = vld [vmem:[#allocation10 + $0x100] sm:$0xf]  ;;  %v1955_v53 = vld [vmem:[#allocation10 + $0x30] sm:$0xf0] }
  0x64   :  { %702 = vmatpush.bf16.msra.mxu0 %v1726_v47  ;;  %715 = vmatpush.bf16.msra.mxu1 %v1854_v51  ;;  %v2503_v47 = vld [vmem:[#allocation10 + $0x1ac] sm:$0xf0]  ;;  %v2038_v51 = vor.u32 %v2473_v40, %v2035_v41  ;;  %v2481_v40 = vld [vmem:[#allocation10 + $0x104] sm:$0xf]  ;;  %v2066_v41 = vor.u32 %v2483_v39, %v2065_v38  ;;  %v2123_v38 = vld [vmem:[#allocation10 + $0x178] sm:$0xf0] }
  0x65   :  { %677 = vmatpush.bf16.msrb.mxu2 %v1706_v55  ;;  %690 = vmatpush.bf16.msrb.mxu3 %v1834_v59  ;;  %v2019_v55 = vld [vmem:[#allocation10 + $0xb0] sm:$0xf0]  ;;  %v2146_v56 = vor.u32 %v2503_v47, %v2145_v46  ;;  %v2499_v59 = vld [vmem:[#allocation10 + $0x18c] sm:$0xf0]  ;;  %v2510_v47 = vld [vmem:[#allocation10 + $0x1ec] sm:$0xf] }
  0x66   :  { %v2022_v63 = vor.u32 %v2469_v54, %v2019_v55  ;;  %v1958_v55 = vor.u32 %v2453_v52, %v1955_v53  ;;  %v1993_v53 = vld [vmem:[#allocation10 + $0x68] sm:$0xf] }
  0x68   :  { %703 = vmatpush.bf16.msra.mxu0 %v1710_v60  ;;  %716 = vmatpush.bf16.msra.mxu1 %v1838_v0  ;;  %v2497_v60 = vld [vmem:[#allocation10 + $0x184] sm:$0xf]  ;;  %v2130_v0 = vor.u32 %v2499_v59, %v2129_v58  ;;  %v2506_v58 = vld [vmem:[#allocation10 + $0x1cc] sm:$0xf] }
  0x69   :  { %678 = vmatpush.bf16.msrb.mxu2 %v1690_v7  ;;  %691 = vmatpush.bf16.msrb.mxu3 %v1818_v8  ;;  %v2134_v1 = vor.u32 %v2497_v60, %v2131_v61  ;;  %v2118_v7 = vor.u32 %v2493_v4, %v2115_v5  ;;  %v2001_v8 = vld [vmem:[#allocation10 + $0x80] sm:$0xf]  ;;  %v2171_v60 = vld [vmem:[#allocation10 + $0x1d8] sm:$0xf0]  ;;  %v2057_v4 = vld [vmem:[#allocation10 + $0xe8] sm:$0xf] }
  0x6a   :  { %v1937_v61 = vld [vmem:[#allocation10] sm:$0xf]  ;;  %v2480_v5 = vld [vmem:[#allocation10 + $0xf4] sm:$0xf0] }
  0x6c   :  { %704 = vmatpush.bf16.msra.mxu0 %v1694_v9  ;;  %717 = vmatpush.bf16.msra.mxu1 %v1822_v10  ;;  %v2467_v9 = vld [vmem:[#allocation10 + $0x8c] sm:$0xf0]  ;;  %v2465_v10 = vld [vmem:[#allocation10 + $0x84] sm:$0xf] }
  0x6d   :  { %v2002_v11 = vor.u32 %v2467_v9, %v2001_v8  ;;  %v2059_v8 = vld [vmem:[#allocation10 + $0xf8] sm:$0xf0]  ;;  %v2153_v9 = vld [vmem:[#allocation10 + $0x1a8] sm:$0xf] }
  0xac   :  { %v204_v14 = vpop.f32.mrf.mxu0  ;;  %v217_v16 = vpop.f32.mrf.mxu1 }
  0xad   :  { %v205_v15 = vadd.f32 %v204_v14, %v172_v12  ;;  %v218_v20 = vadd.f32 %v217_v16, %v173_v13  ;;  %v2003_v12 = vld [vmem:[#allocation10 + $0x90] sm:$0xf0]  ;;  %v2097_v14 = vld [vmem:[#allocation10 + $0x140] sm:$0xf]  ;;  %v2489_v16 = vld [vmem:[#allocation10 + $0x144] sm:$0xf] }
  0xae   :  { %v2006_v13 = vor.u32 %v2465_v10, %v2003_v12  ;;  %v2102_v19 = vor.u32 %v2489_v16, %v2099_v18  ;;  %v2504_v10 = vld [vmem:[#allocation10 + $0x1b4] sm:$0xf0]  ;;  %v2041_v16 = vld [vmem:[#allocation10 + $0xc8] sm:$0xf]  ;;  %v2474_v18 = vld [vmem:[#allocation10 + $0xcc] sm:$0xf] }
  0xaf   :  { %v221_v24 = vmax.f32 %v205_v15, 0.0  ;;  %v222_v27 = vmax.f32 %v218_v20, 0.0  ;;  %v2491_v15 = vld [vmem:[#allocation10 + $0x14c] sm:$0xf0]  ;;  %v1985_v20 = vld [vmem:[#allocation10 + $0x60] sm:$0xf]  ;;  %v2154_v12 = vor.u32 %v2504_v10, %v2153_v9 }
  0xb0   :  { %v2098_v17 = vor.u32 %v2491_v15, %v2097_v14  ;;  %v1986_v23 = vor.u32 %v2463_v21, %v1985_v20  ;;  %v2155_v14 = vld [vmem:[#allocation10 + $0x1b8] sm:$0xf0]  ;;  %v2482_v9 = vld [vmem:[#allocation10 + $0x10c] sm:$0xf] }
  0xb1   :  { %v223_v28 = vpack.c.bf16 %v221_v24, %v221_v24  ;;  %v224_v33 = vpack.c.bf16 %v222_v27, %v222_v27  ;;  %v1987_v24 = vld [vmem:[#allocation10 + $0x70] sm:$0xf0]  ;;  %v2487_v27 = vld [vmem:[#allocation10 + $0x12c] sm:$0xf0]  ;;  %v2043_v20 = vld [vmem:[#allocation10 + $0xd8] sm:$0xf0] }
  0xb2   :  { %v1990_v25 = vor.u32 %v2461_v22, %v1987_v24  ;;  %v2046_v21 = vor.u32 %v2474_v18, %v2043_v20  ;;  %v2137_v22 = vld [vmem:[#allocation10 + $0x188] sm:$0xf]  ;;  %v1963_v18 = vld [vmem:[#allocation10 + $0x38] sm:$0xf0] }
  0xb3   :  { %627 = vmatmul.bf16.vlgmr.msra.gmra.mxu2 %v223_v28  ;;  %653 = vmatmul.bf16.vlgmr.msrb.gmra.mxu0 %v223_v28 }
  0xb4   :  { %640 = vmatmul.bf16.vlgmr.msra.gmra.mxu3 %v224_v33  ;;  %666 = vmatmul.bf16.vlgmr.msrb.gmra.mxu1 %v224_v33  ;;  %v206_v42 = vpop.f32.mrf.mxu0  ;;  %v219_v43 = vpop.f32.mrf.mxu1 }
  0xb5   :  { %1136 = vmatpush.bf16.msra.mxu3 %v2178_v29  ;;  %1162 = vmatpush.bf16.msrb.mxu1 %v2182_v30  ;;  %v2082_v29 = vor.u32 %v2487_v27, %v2081_v26  ;;  %v2083_v30 = vld [vmem:[#allocation10 + $0x130] sm:$0xf0]  ;;  %v2185_v43 = vld [vmem:[#allocation10 + $0x1e8] sm:$0xf]  ;;  %v2139_v26 = vld [vmem:[#allocation10 + $0x198] sm:$0xf0] }
  0xb6   :  { %1123 = vmatpush.bf16.msra.mxu2 %v2050_v36  ;;  %1149 = vmatpush.bf16.msrb.mxu0 %v2054_v37  ;;  %v1971_v36 = vld [vmem:[#allocation10 + $0x50] sm:$0xf0] }
  0xb7   :  { %v1974_v37 = vor.u32 %v2457_v34, %v1971_v36  ;;  %v2067_v42 = vld [vmem:[#allocation10 + $0x110] sm:$0xf0]  ;;  %v2121_v34 = vld [vmem:[#allocation10 + $0x168] sm:$0xf]  ;;  %v2494_v36 = vld [vmem:[#allocation10 + $0x16c] sm:$0xf] }
  0xb8   :  { %v2126_v39 = vor.u32 %v2494_v36, %v2123_v38 }
  0xb9   :  { %1137 = vmatpush.bf16.msra.mxu3 %v2162_v44  ;;  %1163 = vmatpush.bf16.msrb.mxu1 %v2166_v45  ;;  %v2512_v44 = vld [vmem:[#allocation10 + $0x1f4] sm:$0xf0]  ;;  %v2070_v45 = vor.u32 %v2481_v40, %v2067_v42  ;;  %v2009_v40 = vld [vmem:[#allocation10 + $0x88] sm:$0xf]  ;;  %v2466_v42 = vld [vmem:[#allocation10 + $0x8c] sm:$0xf] }
  0xba   :  { %1124 = vmatpush.bf16.msra.mxu2 %v2034_v50  ;;  %1150 = vmatpush.bf16.msrb.mxu0 %v2038_v51  ;;  %v2186_v46 = vor.u32 %v2512_v44, %v2185_v43  ;;  %v2190_v50 = vor.u32 %v2510_v47, %v2187_v48  ;;  %v2455_v51 = vld [vmem:[#allocation10 + $0x2c] sm:$0xf0]  ;;  %v2011_v44 = vld [vmem:[#allocation10 + $0x98] sm:$0xf0]  ;;  %v2492_v47 = vld [vmem:[#allocation10 + $0x154] sm:$0xf0] }
  0xbb   :  { %v1954_v54 = vor.u32 %v2455_v51, %v1953_v49  ;;  %v2490_v48 = vld [vmem:[#allocation10 + $0x14c] sm:$0xf] }
  0xbd   :  { %1138 = vmatpush.bf16.msra.mxu3 %v2146_v56  ;;  %1164 = vmatpush.bf16.msrb.mxu1 %v2150_v57  ;;  %v2169_v56 = vld [vmem:[#allocation10 + $0x1c8] sm:$0xf]  ;;  %v2508_v57 = vld [vmem:[#allocation10 + $0x1d4] sm:$0xf0] }
  0xbe   :  { %1125 = vmatpush.bf16.msra.mxu2 %v2018_v62  ;;  %1151 = vmatpush.bf16.msrb.mxu0 %v2022_v63  ;;  %v2170_v59 = vor.u32 %v2508_v57, %v2169_v56  ;;  %v2174_v62 = vor.u32 %v2506_v58, %v2171_v60  ;;  %v2451_v63 = vld [vmem:[#allocation10 + $0xc] sm:$0xf0]  ;;  %v1995_v58 = vld [vmem:[#allocation10 + $0x78] sm:$0xf0]  ;;  %v2488_v60 = vld [vmem:[#allocation10 + $0x134] sm:$0xf0] }
  0xbf   :  { %v1938_v2 = vor.u32 %v2451_v63, %v1937_v61  ;;  %v2486_v63 = vld [vmem:[#allocation10 + $0x12c] sm:$0xf] }
  0xc1   :  { %1139 = vmatpush.bf16.msra.mxu3 %v2130_v0  ;;  %1165 = vmatpush.bf16.msrb.mxu1 %v2134_v1  ;;  %v2449_v0 = vld [vmem:[#allocation10 + $0x4] sm:$0xf]  ;;  %v1939_v1 = vld [vmem:[#allocation10 + $0x10] sm:$0xf0] }
  0xc2   :  { %1126 = vmatpush.bf16.msra.mxu2 %v2002_v11  ;;  %1152 = vmatpush.bf16.msrb.mxu0 %v2006_v13  ;;  %v1942_v3 = vor.u32 %v2449_v0, %v1939_v1  ;;  %v2502_v13 = vld [vmem:[#allocation10 + $0x1ac] sm:$0xf]  ;;  %v2091_v0 = vld [vmem:[#allocation10 + $0x138] sm:$0xf0]  ;;  %v1977_v1 = vld [vmem:[#allocation10 + $0x48] sm:$0xf] }
  0xc3   :  { %679 = vmatmul.bf16.vlgmr.msrb.gmra.mxu2 %v223_v28  ;;  %705 = vmatmul.bf16.vlgmr.msra.gmra.mxu0 %v223_v28  ;;  %v2485_v28 = vld [vmem:[#allocation10 + $0x124] sm:$0xf]  ;;  %v2158_v15 = vor.u32 %v2502_v13, %v2155_v14  ;;  %v1961_v13 = vld [vmem:[#allocation10 + $0x28] sm:$0xf]  ;;  %v2456_v14 = vld [vmem:[#allocation10 + $0x34] sm:$0xf0] }
  0xc4   :  { %692 = vmatmul.bf16.vlgmr.msrb.gmra.mxu3 %v224_v33  ;;  %718 = vmatmul.bf16.vlgmr.msra.gmra.mxu1 %v224_v33  ;;  %v2086_v31 = vor.u32 %v2485_v28, %v2083_v30  ;;  %v2459_v33 = vld [vmem:[#allocation10 + $0x4c] sm:$0xf0]  ;;  %v2025_v28 = vld [vmem:[#allocation10 + $0xa8] sm:$0xf]  ;;  %v2470_v30 = vld [vmem:[#allocation10 + $0xac] sm:$0xf] }
  0xc5   :  { %1140 = vmatpush.bf16.msra.mxu3 %v2114_v6  ;;  %1166 = vmatpush.bf16.msrb.mxu1 %v2118_v7  ;;  %v1970_v35 = vor.u32 %v2459_v33, %v1969_v32  ;;  %v2478_v6 = vld [vmem:[#allocation10 + $0xec] sm:$0xf]  ;;  %v2058_v7 = vor.u32 %v2480_v5, %v2057_v4  ;;  %v2027_v32 = vld [vmem:[#allocation10 + $0xb8] sm:$0xf0] }
  0xc6   :  { %1127 = vmatpush.bf16.msra.mxu2 %v1986_v23  ;;  %1153 = vmatpush.bf16.msrb.mxu0 %v1990_v25  ;;  %v2062_v11 = vor.u32 %v2478_v6, %v2059_v8  ;;  %v2500_v23 = vld [vmem:[#allocation10 + $0x194] sm:$0xf0]  ;;  %v2498_v25 = vld [vmem:[#allocation10 + $0x18c] sm:$0xf]  ;;  %v2030_v33 = vor.u32 %v2470_v30, %v2027_v32  ;;  %v1979_v5 = vld [vmem:[#allocation10 + $0x58] sm:$0xf0] }
  0xc7   :  { %v2138_v24 = vor.u32 %v2500_v23, %v2137_v22  ;;  %v2142_v27 = vor.u32 %v2498_v25, %v2139_v26  ;;  %v2458_v4 = vld [vmem:[#allocation10 + $0x4c] sm:$0xf]  ;;  %v2484_v8 = vld [vmem:[#allocation10 + $0x114] sm:$0xf0]  ;;  %v1962_v22 = vor.u32 %v2456_v14, %v1961_v13  ;;  %v1945_v26 = vld [vmem:[#allocation10 + $0x8] sm:$0xf] }
  0xc8   :  { %v1982_v10 = vor.u32 %v2458_v4, %v1979_v5  ;;  %v1947_v30 = vld [vmem:[#allocation10 + $0x18] sm:$0xf0]  ;;  %v2307_v5 = vld [vmem:[#allocation13 + $0xe8] sm:$0xf0]  ;;  %v2297_v13 = vld [vmem:[#allocation13 + $0xd0] sm:$0xf] }
  0xc9   :  { %1141 = vmatpush.bf16.msra.mxu3 %v2098_v17  ;;  %1167 = vmatpush.bf16.msrb.mxu1 %v2102_v19  ;;  %v2476_v17 = vld [vmem:[#allocation10 + $0xd4] sm:$0xf0]  ;;  %v2540_v14 = vld [vmem:[#allocation13 + $0xd4] sm:$0xf0] }
  0xca   :  { %1128 = vmatpush.bf16.msra.mxu2 %v1970_v35  ;;  %1154 = vmatpush.bf16.msrb.mxu0 %v1974_v37  ;;  %v2042_v19 = vor.u32 %v2476_v17, %v2041_v16  ;;  %v2496_v35 = vld [vmem:[#allocation10 + $0x174] sm:$0xf0]  ;;  %v2454_v17 = vld [vmem:[#allocation10 + $0x2c] sm:$0xf] }
  0xcb   :  { %v2122_v37 = vor.u32 %v2496_v35, %v2121_v34 }
  0xcd   :  { %1142 = vmatpush.bf16.msra.mxu3 %v2082_v29  ;;  %1168 = vmatpush.bf16.msrb.mxu1 %v2086_v31  ;;  %v2472_v29 = vld [vmem:[#allocation10 + $0xb4] sm:$0xf0] }
  0xce   :  { %1129 = vmatpush.bf16.msra.mxu2 %v1954_v54  ;;  %1155 = vmatpush.bf16.msrb.mxu0 %v1958_v55  ;;  %v2026_v31 = vor.u32 %v2472_v29, %v2025_v28  ;;  %v2464_v54 = vld [vmem:[#allocation10 + $0x74] sm:$0xf0]  ;;  %v2462_v55 = vld [vmem:[#allocation10 + $0x6c] sm:$0xf] }
  0xcf   :  { %v1994_v57 = vor.u32 %v2464_v54, %v1993_v53  ;;  %v1998_v61 = vor.u32 %v2462_v55, %v1995_v58  ;;  %v2450_v28 = vld [vmem:[#allocation10 + $0xc] sm:$0xf] }
  0xd0   :  { %v1950_v32 = vor.u32 %v2450_v28, %v1947_v30 }
  0xd1   :  { %1143 = vmatpush.bf16.msra.mxu3 %v2066_v41  ;;  %1169 = vmatpush.bf16.msrb.mxu1 %v2070_v45  ;;  %v2468_v41 = vld [vmem:[#allocation10 + $0x94] sm:$0xf0]  ;;  %v2014_v45 = vor.u32 %v2466_v42, %v2011_v44 }
  0xd2   :  { %1130 = vmatpush.bf16.msra.mxu2 %v1938_v2  ;;  %1156 = vmatpush.bf16.msrb.mxu0 %v1942_v3  ;;  %v2010_v43 = vor.u32 %v2468_v41, %v2009_v40  ;;  %v2094_v2 = vor.u32 %v2486_v63, %v2091_v0  ;;  %v2460_v3 = vld [vmem:[#allocation10 + $0x54] sm:$0xf0]  ;;  %v2315_v63 = vld [vmem:[#allocation13 + $0xf8] sm:$0xf0] }
  0xd3   :  { %v1978_v6 = vor.u32 %v2460_v3, %v1977_v1  ;;  %v2305_v1 = vld [vmem:[#allocation13 + $0xe0] sm:$0xf]  ;;  %v2541_v3 = vld [vmem:[#allocation13 + $0xe4] sm:$0xf] }
  0xd5   :  { %1188 = vmatpush.bf16.msrb.mxu3 %v2186_v46  ;;  %1214 = vmatpush.bf16.msra.mxu1 %v2190_v50  ;;  %v2105_v46 = vld [vmem:[#allocation10 + $0x148] sm:$0xf]  ;;  %v2107_v50 = vld [vmem:[#allocation10 + $0x158] sm:$0xf0] }
  0xd6   :  { %1175 = vmatpush.bf16.msrb.mxu2 %v2058_v7  ;;  %1201 = vmatpush.bf16.msra.mxu0 %v2062_v11  ;;  %v2106_v49 = vor.u32 %v2492_v47, %v2105_v46  ;;  %v2110_v52 = vor.u32 %v2490_v48, %v2107_v50  ;;  %v2073_v7 = vld [vmem:[#allocation10 + $0x108] sm:$0xf] }
  0xd7   :  { %v2074_v11 = vor.u32 %v2484_v8, %v2073_v7  ;;  %v2249_v7 = vld [vmem:[#allocation13 + $0x70] sm:$0xf]  ;;  %v2528_v8 = vld [vmem:[#allocation13 + $0x74] sm:$0xf0] }
  0xd9   :  { %1189 = vmatpush.bf16.msrb.mxu3 %v2170_v59  ;;  %1215 = vmatpush.bf16.msra.mxu1 %v2174_v62  ;;  %v2089_v59 = vld [vmem:[#allocation10 + $0x128] sm:$0xf] }
  0xda   :  { %1176 = vmatpush.bf16.msrb.mxu2 %v2042_v19  ;;  %1202 = vmatpush.bf16.msra.mxu0 %v2046_v21  ;;  %v2090_v62 = vor.u32 %v2488_v60, %v2089_v59  ;;  %v289_v19 = vld [vmem:[%s2929_s4] sm:$0xf]  ;;  %v2313_v59 = vld [vmem:[#allocation13 + $0xf0] sm:$0xf]  ;;  %v2544_v60 = vld [vmem:[#allocation13 + $0xf4] sm:$0xf0] }
  0xdb   :  { %v292_v25 = vperm.slane %v289_v19, 1  ;;  %v293_v42 = vperm.slane %v289_v19, 2 }
  0xdd   :  { %1190 = vmatpush.bf16.msrb.mxu3 %v2154_v12  ;;  %1216 = vmatpush.bf16.msra.mxu1 %v2158_v15  ;;  %v2075_v12 = vld [vmem:[#allocation10 + $0x118] sm:$0xf0] }
  0xde   :  { %1177 = vmatpush.bf16.msrb.mxu2 %v2026_v31  ;;  %1203 = vmatpush.bf16.msra.mxu0 %v2030_v33  ;;  %v2078_v16 = vor.u32 %v2482_v9, %v2075_v12  ;;  %v294_v31 = vperm.slane %v289_v19, 3  ;;  %v2250_v9 = vor.u32 %v2528_v8, %v2249_v7  ;;  %v2211_v7 = vld [vmem:[#allocation13 + $0x28] sm:$0xf0] }
  0xe1   :  { %1191 = vmatpush.bf16.msrb.mxu3 %v2138_v24  ;;  %1217 = vmatpush.bf16.msra.mxu1 %v2142_v27  ;;  %v1966_v24 = vor.u32 %v2454_v17, %v1963_v18  ;;  %v2452_v27 = vld [vmem:[#allocation10 + $0x14] sm:$0xf0]  ;;  %v2299_v17 = vld [vmem:[#allocation13 + $0xd8] sm:$0xf0] }
  0xe2   :  { %1178 = vmatpush.bf16.msrb.mxu2 %v2010_v43  ;;  %1204 = vmatpush.bf16.msra.mxu0 %v2014_v45  ;;  %v1946_v29 = vor.u32 %v2452_v27, %v1945_v26  ;;  %v2538_v26 = vld [vmem:[#allocation13 + $0xc4] sm:$0xf0]  ;;  %v2537_v27 = vld [vmem:[#allocation13 + $0xc4] sm:$0xf] }
  0xe5   :  { %1192 = vmatpush.bf16.msrb.mxu3 %v2122_v37  ;;  %1218 = vmatpush.bf16.msra.mxu1 %v2126_v39  ;;  %v291_v37 = vperm.slane %v289_v19, 0  ;;  %v2241_v19 = vld [vmem:[#allocation13 + $0x60] sm:$0xf] }
  0xe6   :  { %1179 = vmatpush.bf16.msrb.mxu2 %v1994_v57  ;;  %1205 = vmatpush.bf16.msra.mxu0 %v1998_v61  ;;  %v2543_v61 = vld [vmem:[#allocation13 + $0xf4] sm:$0xf] }
  0xe7   :  { %v2318_v0 = vor.u32 %v2543_v61, %v2315_v63  ;;  %v2265_v61 = vld [vmem:[#allocation13 + $0x90] sm:$0xf]  ;;  %v2531_v63 = vld [vmem:[#allocation13 + $0x94] sm:$0xf] }
  0xe9   :  { %1193 = vmatpush.bf16.msrb.mxu3 %v2106_v49  ;;  %1219 = vmatpush.bf16.msra.mxu1 %v2110_v52 }
  0xea   :  { %1180 = vmatpush.bf16.msrb.mxu2 %v1978_v6  ;;  %1206 = vmatpush.bf16.msra.mxu0 %v1982_v10  ;;  %v2310_v6 = vor.u32 %v2541_v3, %v2307_v5  ;;  %v2527_v10 = vld [vmem:[#allocation13 + $0x74] sm:$0xf]  ;;  %v2209_v3 = vld [vmem:[#allocation13 + $0x20] sm:$0xf]  ;;  %v2517_v5 = vld [vmem:[#allocation13 + $0x24] sm:$0xf] }
  0xeb   :  { %v2214_v8 = vor.u32 %v2517_v5, %v2211_v7  ;;  %v2556_v5 = vld [vmem:[#allocation14 + $0x58] sm:$0xff]  ;;  %v2555_v7 = vld [vmem:[#allocation14 + $0x50] sm:$0xff] }
  0xed   :  { %1194 = vmatpush.bf16.msrb.mxu3 %v2090_v62  ;;  %1220 = vmatpush.bf16.msra.mxu1 %v2094_v2  ;;  %v2314_v62 = vor.u32 %v2544_v60, %v2313_v59  ;;  %v2542_v2 = vld [vmem:[#allocation13 + $0xe4] sm:$0xf0]  ;;  %v2219_v59 = vld [vmem:[#allocation13 + $0x38] sm:$0xf0] }
  0xee   :  { %1181 = vmatpush.bf16.msrb.mxu2 %v1962_v22  ;;  %1207 = vmatpush.bf16.msra.mxu0 %v1966_v24  ;;  %v2306_v4 = vor.u32 %v2542_v2, %v2305_v1  ;;  %v2267_v1 = vld [vmem:[#allocation13 + $0x98] sm:$0xf0] }
  0xef   :  { %v2270_v2 = vor.u32 %v2531_v63, %v2267_v1 }
  0xf1   :  { %1195 = vmatpush.bf16.msrb.mxu3 %v2074_v11  ;;  %1221 = vmatpush.bf16.msra.mxu1 %v2078_v16  ;;  %v2251_v11 = vld [vmem:[#allocation13 + $0x78] sm:$0xf0]  ;;  %v2298_v16 = vor.u32 %v2540_v14, %v2297_v13  ;;  %v2259_v13 = vld [vmem:[#allocation13 + $0x88] sm:$0xf0] }
  0xf2   :  { %1182 = vmatpush.bf16.msrb.mxu2 %v1946_v29  ;;  %1208 = vmatpush.bf16.msra.mxu0 %v1950_v32  ;;  %v2254_v12 = vor.u32 %v2527_v10, %v2251_v11  ;;  %v2291_v29 = vld [vmem:[#allocation13 + $0xc8] sm:$0xf0]  ;;  %v2524_v32 = vld [vmem:[#allocation13 + $0x54] sm:$0xf0]  ;;  %v2530_v10 = vld [vmem:[#allocation13 + $0x84] sm:$0xf0] }
  0xf3   :  { %v2294_v30 = vor.u32 %v2537_v27, %v2291_v29 }
 0x130   :  { %v654_v51 = vpop.f32.mrf.mxu0 }
 0x131   :  { %v2907_v56 = vpop.f32.mrf.mxu1  ;;  %v655_v34 = vadd.f32 %v654_v51, %v292_v25  ;;  %v2289_v25 = vld [vmem:[#allocation13 + $0xc0] sm:$0xf] }
 0x132   :  { %v2290_v28 = vor.u32 %v2538_v26, %v2289_v25  ;;  %v2195_v26 = vld [vmem:[#allocation13 + $0x8] sm:$0xf0] }
 0x133   :  { %v668_v40 = vadd.f32 %v2907_v56, %v655_v34 }
 0x136   :  { %v628_v15 = vpop.f32.mrf.mxu2 }
 0x137   :  { %v641_v20 = vpop.f32.mrf.mxu3  ;;  %v629_v43 = vadd.f32 %v628_v15, %v291_v37  ;;  %v2539_v15 = vld [vmem:[#allocation13 + $0xd4] sm:$0xf]  ;;  %v2281_v37 = vld [vmem:[#allocation13 + $0xb0] sm:$0xf] }
 0x138   :  { %v656_v21 = vpop.f32.mrf.mxu0  ;;  %v2302_v18 = vor.u32 %v2539_v15, %v2299_v17  ;;  %v2201_v15 = vld [vmem:[#allocation13 + $0x10] sm:$0xf]  ;;  %v2515_v17 = vld [vmem:[#allocation13 + $0x14] sm:$0xf] }
 0x139   :  { %v669_v23 = vpop.f32.mrf.mxu1  ;;  %v642_v50 = vadd.f32 %v641_v20, %v629_v43  ;;  %v2526_v20 = vld [vmem:[#allocation13 + $0x64] sm:$0xf0]  ;;  %v2525_v21 = vld [vmem:[#allocation13 + $0x64] sm:$0xf]  ;;  %v2225_v43 = vld [vmem:[#allocation13 + $0x40] sm:$0xf] }
 0x13a   :  { %v2242_v22 = vor.u32 %v2526_v20, %v2241_v19  ;;  %v2243_v23 = vld [vmem:[#allocation13 + $0x68] sm:$0xf0]  ;;  %v2203_v19 = vld [vmem:[#allocation13 + $0x18] sm:$0xf0] }
 0x13b   :  { %v2246_v24 = vor.u32 %v2525_v21, %v2243_v23  ;;  %v2206_v21 = vor.u32 %v2515_v17, %v2203_v19  ;;  %v2514_v23 = vld [vmem:[#allocation13 + $0x4] sm:$0xf0] }
 0x13e   :  { %v630_v33 = vpop.f32.mrf.mxu2 }
 0x13f   :  { %v643_v35 = vpop.f32.mrf.mxu3  ;;  %v2523_v33 = vld [vmem:[#allocation13 + $0x54] sm:$0xf] }
 0x140   :  { %v706_v36 = vpop.f32.mrf.mxu0  ;;  %v2235_v35 = vld [vmem:[#allocation13 + $0x58] sm:$0xf0] }
 0x141   :  { %v707_v38 = vadd.f32 %v706_v36, %v294_v31  ;;  %v719_v39 = vpop.f32.mrf.mxu1  ;;  %v2233_v31 = vld [vmem:[#allocation13 + $0x50] sm:$0xf]  ;;  %v2238_v36 = vor.u32 %v2523_v33, %v2235_v35 }
 0x142   :  { %v2234_v34 = vor.u32 %v2524_v32, %v2233_v31  ;;  %v2552_v31 = vld [vmem:[#allocation14 + $0x38] sm:$0xff]  ;;  %v2559_v33 = vld [vmem:[#allocation14 + $0x70] sm:$0xff] }
 0x143   :  { %v720_v41 = vadd.f32 %v719_v39, %v707_v38  ;;  %v2536_v38 = vld [vmem:[#allocation13 + $0xb4] sm:$0xf0]  ;;  %v2535_v39 = vld [vmem:[#allocation13 + $0xb4] sm:$0xf] }
 0x145   :  { %v724_v44 = vmax.f32 %v668_v40, %v720_v41  ;;  %v2282_v40 = vor.u32 %v2536_v38, %v2281_v37  ;;  %v2283_v41 = vld [vmem:[#allocation13 + $0xb8] sm:$0xf0]  ;;  %v2550_v37 = vld [vmem:[#allocation14 + $0x28] sm:$0xff] }
 0x146   :  { %v680_v45 = vpop.f32.mrf.mxu2  ;;  %v793_v38 = vld [vmem:[#allocation11] sm:$0xf] }
 0x147   :  { %v726_v46 = vmax.f32 %v724_v44, 0.0  ;;  %v681_v47 = vadd.f32 %v680_v45, %v293_v42  ;;  %v693_v48 = vpop.f32.mrf.mxu3  ;;  %v2286_v42 = vor.u32 %v2535_v39, %v2283_v41  ;;  %v2522_v44 = vld [vmem:[#allocation13 + $0x44] sm:$0xf0]  ;;  %v2521_v45 = vld [vmem:[#allocation13 + $0x44] sm:$0xf] }
 0x148   :  { %v708_v49 = vpop.f32.mrf.mxu0 }
 0x149   :  { %v728_v51 = vpack.c.bf16 %v726_v46, %v726_v46  ;;  %v694_v52 = vadd.f32 %v693_v48, %v681_v47  ;;  %v721_v53 = vpop.f32.mrf.mxu1  ;;  %v2226_v46 = vor.u32 %v2522_v44, %v2225_v43  ;;  %v2227_v47 = vld [vmem:[#allocation13 + $0x48] sm:$0xf0]  ;;  %v2273_v49 = vld [vmem:[#allocation13 + $0xa0] sm:$0xf]  ;;  %v798_v44 = vperm.slane %v793_v38, 3 }
 0x14a   :  { %v2230_v48 = vor.u32 %v2521_v45, %v2227_v47  ;;  %v2275_v53 = vld [vmem:[#allocation13 + $0xa8] sm:$0xf0]  ;;  %v2557_v43 = vld [vmem:[#allocation14 + $0x60] sm:$0xff] }
 0x14b   :  { %v723_v54 = vmax.f32 %v642_v50, %v694_v52  ;;  %1144 = vmatmul.bf16.vlgmr.msra.gmra.mxu3 %v728_v51  ;;  %1170 = vmatmul.bf16.vlgmr.msrb.gmra.mxu1 %v728_v51  ;;  %v2534_v50 = vld [vmem:[#allocation13 + $0xa4] sm:$0xf0] }
 0x14c   :  { %1444 = vmatpush.bf16.msra.mxu3 %v2314_v62  ;;  %1470 = vmatpush.bf16.msrb.mxu1 %v2318_v0  ;;  %v2274_v52 = vor.u32 %v2534_v50, %v2273_v49  ;;  %v2532_v62 = vld [vmem:[#allocation13 + $0x94] sm:$0xf0]  ;;  %v795_v49 = vperm.slane %v793_v38, 0 }
 0x14d   :  { %v725_v55 = vmax.f32 %v723_v54, 0.0  ;;  %v2266_v0 = vor.u32 %v2532_v62, %v2265_v61 }
 0x14e   :  { %v682_v57 = vpop.f32.mrf.mxu2 }
 0x14f   :  { %v727_v58 = vpack.c.bf16 %v725_v55, %v725_v55  ;;  %v695_v56 = vpop.f32.mrf.mxu3  ;;  %v2217_v55 = vld [vmem:[#allocation13 + $0x30] sm:$0xf]  ;;  %v2520_v57 = vld [vmem:[#allocation13 + $0x34] sm:$0xf0] }
 0x150   :  { %1445 = vmatpush.bf16.msra.mxu3 %v2306_v4  ;;  %1471 = vmatpush.bf16.msrb.mxu1 %v2310_v6  ;;  %v2519_v56 = vld [vmem:[#allocation13 + $0x34] sm:$0xf]  ;;  %v2518_v4 = vld [vmem:[#allocation13 + $0x24] sm:$0xf0] }
 0x151   :  { %1131 = vmatmul.bf16.vlgmr.msra.gmra.mxu2 %v727_v58  ;;  %1157 = vmatmul.bf16.vlgmr.msrb.gmra.mxu0 %v727_v58  ;;  %v2222_v60 = vor.u32 %v2519_v56, %v2219_v59  ;;  %v2210_v6 = vor.u32 %v2518_v4, %v2209_v3 }
 0x152   :  { %1431 = vmatpush.bf16.msra.mxu2 %v2250_v9  ;;  %1457 = vmatpush.bf16.msrb.mxu0 %v2254_v12  ;;  %v2257_v9 = vld [vmem:[#allocation13 + $0x80] sm:$0xf]  ;;  %v2529_v12 = vld [vmem:[#allocation13 + $0x84] sm:$0xf] }
 0x153   :  { %v2258_v11 = vor.u32 %v2530_v10, %v2257_v9  ;;  %v2262_v14 = vor.u32 %v2529_v12, %v2259_v13  ;;  %v2554_v9 = vld [vmem:[#allocation14 + $0x48] sm:$0xff]  ;;  %v2547_v10 = vld [vmem:[#allocation14 + $0x10] sm:$0xff]  ;;  %v2545_v13 = vld [vmem:[#allocation14] sm:$0xff] }
 0x154   :  { %1446 = vmatpush.bf16.msra.mxu3 %v2298_v16  ;;  %1472 = vmatpush.bf16.msrb.mxu1 %v2302_v18  ;;  %v2516_v16 = vld [vmem:[#allocation13 + $0x14] sm:$0xf0]  ;;  %v2546_v12 = vld [vmem:[#allocation14 + $0x8] sm:$0xff] }
 0x155   :  { %v2202_v18 = vor.u32 %v2516_v16, %v2201_v15  ;;  %v1265_v15 = vld [vmem:[%s2933_s8] sm:$0x3] }
 0x156   :  { %1432 = vmatpush.bf16.msra.mxu2 %v2242_v22  ;;  %1458 = vmatpush.bf16.msrb.mxu0 %v2246_v24  ;;  %v2193_v22 = vld [vmem:[#allocation13] sm:$0xf]  ;;  %v2513_v24 = vld [vmem:[#allocation13 + $0x4] sm:$0xf]  ;;  %v1268_v16 = vperm.slane %v1265_v15, 1 }
 0x157   :  { %v2194_v25 = vor.u32 %v2514_v23, %v2193_v22  ;;  %v2198_v27 = vor.u32 %v2513_v24, %v2195_v26  ;;  %v1267_v22 = vperm.slane %v1265_v15, 0 }
 0x158   :  { %1447 = vmatpush.bf16.msra.mxu3 %v2290_v28  ;;  %1473 = vmatpush.bf16.msrb.mxu1 %v2294_v30  ;;  %v2560_v30 = vld [vmem:[#allocation14 + $0x78] sm:$0xff] }
 0x15a   :  { %1433 = vmatpush.bf16.msra.mxu2 %v2234_v34  ;;  %1459 = vmatpush.bf16.msrb.mxu0 %v2238_v36  ;;  %v2551_v34 = vld [vmem:[#allocation14 + $0x30] sm:$0xff]  ;;  %v2558_v36 = vld [vmem:[#allocation14 + $0x68] sm:$0xff] }
 0x15b   :  { %1196 = vmatmul.bf16.vlgmr.msrb.gmra.mxu3 %v728_v51  ;;  %1222 = vmatmul.bf16.vlgmr.msra.gmra.mxu1 %v728_v51  ;;  %v2533_v51 = vld [vmem:[#allocation13 + $0xa4] sm:$0xf] }
 0x15c   :  { %1448 = vmatpush.bf16.msra.mxu3 %v2282_v40  ;;  %1474 = vmatpush.bf16.msrb.mxu1 %v2286_v42  ;;  %v2278_v54 = vor.u32 %v2533_v51, %v2275_v53  ;;  %v796_v42 = vperm.slane %v793_v38, 1 }
 0x15e   :  { %1434 = vmatpush.bf16.msra.mxu2 %v2226_v46  ;;  %1460 = vmatpush.bf16.msrb.mxu0 %v2230_v48 }
 0x160   :  { %1449 = vmatpush.bf16.msra.mxu3 %v2274_v52  ;;  %1475 = vmatpush.bf16.msrb.mxu1 %v2278_v54  ;;  %v797_v54 = vperm.slane %v793_v38, 2 }
 0x161   :  { %1183 = vmatmul.bf16.vlgmr.msrb.gmra.mxu2 %v727_v58  ;;  %1209 = vmatmul.bf16.vlgmr.msra.gmra.mxu0 %v727_v58  ;;  %v2218_v58 = vor.u32 %v2520_v57, %v2217_v55 }
 0x162   :  { %1461 = vmatpush.bf16.msrb.mxu0 %v2222_v60 }
 0x163   :  { %1435 = vmatpush.bf16.msra.mxu2 %v2218_v58 }
 0x164   :  { %1450 = vmatpush.bf16.msra.mxu3 %v2266_v0  ;;  %1476 = vmatpush.bf16.msrb.mxu1 %v2270_v2 }
 0x166   :  { %1462 = vmatpush.bf16.msrb.mxu0 %v2214_v8  ;;  %v2548_v8 = vld [vmem:[#allocation14 + $0x18] sm:$0xff] }
 0x167   :  { %1436 = vmatpush.bf16.msra.mxu2 %v2210_v6  ;;  %v2549_v6 = vld [vmem:[#allocation14 + $0x20] sm:$0xff] }
 0x168   :  { %1451 = vmatpush.bf16.msra.mxu3 %v2258_v11  ;;  %1477 = vmatpush.bf16.msrb.mxu1 %v2262_v14  ;;  %v2553_v11 = vld [vmem:[#allocation14 + $0x40] sm:$0xff] }
 0x16a   :  { %1463 = vmatpush.bf16.msrb.mxu0 %v2206_v21 }
 0x16b   :  { %1437 = vmatpush.bf16.msra.mxu2 %v2202_v18 }
 0x16c   :  { %1632 = vmatpush.bf16.msrb.mxu3 %v2560_v30 }
 0x16e   :  { %1464 = vmatpush.bf16.msrb.mxu0 %v2198_v27 }
 0x16f   :  { %1438 = vmatpush.bf16.msra.mxu2 %v2194_v25 }
 0x170   :  { %1633 = vmatpush.bf16.msrb.mxu3 %v2559_v33 }
 0x173   :  { %1619 = vmatpush.bf16.msrb.mxu2 %v2552_v31 }
 0x174   :  { %1634 = vmatpush.bf16.msrb.mxu3 %v2558_v36 }
 0x177   :  { %1620 = vmatpush.bf16.msrb.mxu2 %v2551_v34  ;;  %v2575_v34 = vld [vmem:[%s2935_s10] ss:$0 sm:$0xff] }
 0x178   :  { %1635 = vmatpush.bf16.msrb.mxu3 %v2557_v43  ;;  %v2577_v43 = vld [vmem:[#allocation2] ss:$0 sm:$0xff] }
 0x17b   :  { %1621 = vmatpush.bf16.msrb.mxu2 %v2550_v37 }
 0x17c   :  { %1636 = vmatpush.bf16.msrb.mxu3 %v2556_v5 }
 0x17f   :  { %1622 = vmatpush.bf16.msrb.mxu2 %v2549_v6 }
 0x180   :  { %1637 = vmatpush.bf16.msrb.mxu3 %v2555_v7 }
 0x183   :  { %1623 = vmatpush.bf16.msrb.mxu2 %v2548_v8 }
 0x184   :  { %1638 = vmatpush.bf16.msrb.mxu3 %v2554_v9 }
 0x187   :  { %1624 = vmatpush.bf16.msrb.mxu2 %v2547_v10 }
 0x188   :  { %1639 = vmatpush.bf16.msrb.mxu3 %v2553_v11 }
 0x18b   :  { %1625 = vmatpush.bf16.msrb.mxu2 %v2546_v12 }
 0x18f   :  { %1626 = vmatpush.bf16.msrb.mxu2 %v2545_v13 }
 0x1c8   :  { %v1171_v20 = vpop.f32.mrf.mxu1 }
 0x1ce   :  { %v1145_v28 = vpop.f32.mrf.mxu3  ;;  %v1158_v29 = vpop.f32.mrf.mxu0 }
 0x1cf   :  { %v1159_v46 = vadd.f32 %v1158_v29, %v796_v42 }
 0x1d0   :  { %v1173_v32 = vpop.f32.mrf.mxu1 }
 0x1d1   :  { %v1172_v52 = vadd.f32 %v1171_v20, %v1159_v46 }
 0x1d4   :  { %v1132_v35 = vpop.f32.mrf.mxu2 }
 0x1d5   :  { %v1133_v55 = vadd.f32 %v1132_v35, %v795_v49 }
 0x1d6   :  { %v1147_v39 = vpop.f32.mrf.mxu3  ;;  %v1160_v40 = vpop.f32.mrf.mxu0 }
 0x1d7   :  { %v1146_v62 = vadd.f32 %v1145_v28, %v1133_v55  ;;  %v2576_v39 = vld [vmem:[%s2936_s11] ss:$0 sm:$0xff] }
 0x1d8   :  { %v1223_v41 = vpop.f32.mrf.mxu1 }
 0x1dc   :  { %v1134_v45 = vpop.f32.mrf.mxu2 }
 0x1de   :  { %v1197_v47 = vpop.f32.mrf.mxu3  ;;  %v1210_v48 = vpop.f32.mrf.mxu0 }
 0x1df   :  { %v1211_v50 = vadd.f32 %v1210_v48, %v798_v44 }
 0x1e0   :  { %v1225_v51 = vpop.f32.mrf.mxu1 }
 0x1e1   :  { %v1224_v53 = vadd.f32 %v1223_v41, %v1211_v50 }
 0x1e3   :  { %v1228_v57 = vmax.f32 %v1172_v52, %v1224_v53 }
 0x1e4   :  { %v1184_v58 = vpop.f32.mrf.mxu2 }
 0x1e5   :  { %v1230_v56 = vmax.f32 %v1228_v57, 0.0  ;;  %v1185_v59 = vadd.f32 %v1184_v58, %v797_v54 }
 0x1e6   :  { %v1199_v60 = vpop.f32.mrf.mxu3  ;;  %v1212_v61 = vpop.f32.mrf.mxu0 }
 0x1e7   :  { %v1232_v63 = vpack.c.bf16 %v1230_v56, %v1230_v56  ;;  %v1198_v0 = vadd.f32 %v1197_v47, %v1185_v59 }
 0x1e9   :  { %v1227_v1 = vmax.f32 %v1146_v62, %v1198_v0  ;;  %1452 = vmatmul.bf16.vlgmr.msra.gmra.mxu3 %v1232_v63  ;;  %1478 = vmatmul.bf16.vlgmr.msrb.gmra.mxu1 %v1232_v63 }
 0x1eb   :  { %v1229_v2 = vmax.f32 %v1227_v1, 0.0 }
 0x1ec   :  { %v1186_v3 = vpop.f32.mrf.mxu2 }
 0x1ed   :  { %v1231_v4 = vpack.c.bf16 %v1229_v2, %v1229_v2 }
 0x1ef   :  { %1439 = vmatmul.bf16.vlgmr.msra.gmra.mxu2 %v1231_v4  ;;  %1465 = vmatmul.bf16.vlgmr.msrb.gmra.mxu0 %v1231_v4 }
 0x266   :  { %v1479_v14 = vpop.f32.mrf.mxu1 }
 0x26c   :  { %v1453_v17 = vpop.f32.mrf.mxu3  ;;  %v1466_v18 = vpop.f32.mrf.mxu0 }
 0x26d   :  { %v1467_v19 = vadd.f32 %v1466_v18, %v1268_v16 }
 0x26e   :  { %v1481_v20 = vpop.f32.mrf.mxu1 }
 0x26f   :  { %v1480_v21 = vadd.f32 %v1479_v14, %v1467_v19 }
 0x271   :  { %v1484_v23 = vmax.f32 %v1480_v21, 0.0 }
 0x272   :  { %v1440_v24 = vpop.f32.mrf.mxu2 }
 0x273   :  { %v1486_v25 = vpack.c.bf16 %v1484_v23, %v1484_v23  ;;  %v1441_v26 = vadd.f32 %v1440_v24, %v1267_v22 }
 0x274   :  { %v1455_v27 = vpop.f32.mrf.mxu3  ;;  %v1468_v28 = vpop.f32.mrf.mxu0 }
 0x275   :  { %v1454_v29 = vadd.f32 %v1453_v17, %v1441_v26  ;;  %1640 = vmatmul.bf16.vlgmr.msrb.gmra.mxu3 %v1486_v25 }
 0x277   :  { %v1483_v30 = vmax.f32 %v1454_v29, 0.0 }
 0x279   :  { %v1485_v31 = vpack.c.bf16 %v1483_v30, %v1483_v30 }
 0x27a   :  { %v1442_v32 = vpop.f32.mrf.mxu2 }
 0x27b   :  { %1627 = vmatmul.bf16.vlgmr.msrb.gmra.mxu2 %v1485_v31 }
 0x2f8   :  { %v1641_v33 = vpop.f32.mrf.mxu3 }
 0x2fe   :  { %v1628_v35 = vpop.f32.mrf.mxu2 }
 0x2ff   :  { %v1629_v36 = vadd.f32 %v2575_v34, %v1628_v35 }
 0x300   :  { %v1643_v37 = vpop.f32.mrf.mxu3 }
 0x301   :  { %v1642_v38 = vadd.f32 %v1641_v33, %v1629_v36 }
 0x303   :  { %v1645_v40 = vmax.f32 %v1642_v38, 0.0 }
 0x305   :  { %v1650_v41 = vmul.f32 %v2576_v39, %v1645_v40 }
 0x306   :  { %v1630_v42 = vpop.f32.mrf.mxu2 }
 0x307   :  { %1651 = vadd.xlane.f32.xlu0 %v1650_v41 }
 0x37a   :  { %v1652_v44 = vpop.xlane.xlu0 %1651 }
 0x37b   :  { %v1657_v45 = vadd.f32 %v2577_v43, %v1652_v44 }
 0x37d   :  { %1659 = vst.msk [vmem:[%s2938_s13] sm:$0xff] %vm1658_vm2, %v1657_v45 }
 0x37e   :  { %1664 = vsyncpa [#allocation4], 1 }
 0x37f   :  { %1665 = vsyncpa [#allocation6], 1 }
 0x380   :  { %1666 = vsyncpa [#allocation9], 1 }
 0x381   :  { %1667 = vsyncpa [#allocation12], 1 }
 0x382   :  { %1668 = vsyncpa [#allocation15], 1 }

</bundles_post_ra>
